<compile_context>
chip_gen: v7x
topology: tpu7x:2x2x1
jax: 0.10.0
libtpu: 0.0.40
codegen_flags: <defaults>
</compile_context>

<pallas_src>
import math

import jax
import jax.numpy as jnp
import numpy as np
from jax.experimental import pallas as pl
from jax.experimental.pallas import tpu as pltpu

# ----- model hyper-parameters (small, consistent with the module) -----
BATCH = 2
SEQ = 8
EMBED = 32
NUM_HEADS = 4
HEAD_DIM = EMBED // NUM_HEADS
FFN = 64
LN_EPS = 1e-5


def _encoder_kernel(x_ref,
                    wq_ref, bq_ref, wk_ref, bk_ref, wv_ref, bv_ref,
                    wo_ref, bo_ref,
                    w1_ref, b1_ref, w2_ref, b2_ref,
                    g1_ref, be1_ref, g2_ref, be2_ref,
                    out_ref):
    # Single grid step: everything (weights + activations, a few KiB) is resident in VMEM.
    x = x_ref[...].astype(jnp.float32)            # (B, S, E)
    B, S, E = x.shape
    HB = wq_ref.shape[0]                          # H * B  (head-major:  n = h*B + b)
    H = HB // B

    # ---------- Q/K/V projections, batched over (head, batch) ----------
    # Replicate x once per head along the leading axis (n = h*B + b -> x[b]).
    x_hb = jnp.concatenate([x] * H, axis=0)       # (H*B, S, E)

    # attention scale 1/sqrt(hd) is already folded into wq/bq by the wrapper.
    q = jnp.einsum('nse,ned->nsd', x_hb, wq_ref[...],
                   preferred_element_type=jnp.float32) + bq_ref[...]   # (HB, S, hd)
    k = jnp.einsum('nse,ned->nsd', x_hb, wk_ref[...],
                   preferred_element_type=jnp.float32) + bk_ref[...]
    v = jnp.einsum('nse,ned->nsd', x_hb, wv_ref[...],
                   preferred_element_type=jnp.float32) + bv_ref[...]

    # ---------- scaled dot-product attention (softmax over keys) ----------
    scores = jnp.einsum('nqd,nkd->nqk', q, k,
                        preferred_element_type=jnp.float32)            # (HB, S, S)
    scores = scores - jnp.max(scores, axis=-1, keepdims=True)
    p = jnp.exp(scores)
    p = p * pl.reciprocal(jnp.sum(p, axis=-1, keepdims=True), approx=True)
    ctx = jnp.einsum('nqk,nkd->nqd', p, v,
                     preferred_element_type=jnp.float32)               # (HB, S, hd)

    # ---------- output projection: per-head partials summed over heads ----------
    # wo_ref[n] is the (hd, E) slice of W_out for head h = n // B, so summing the
    # per-head partials reproduces  concat_heads(ctx) @ W_out  without a concatenate.
    partial = jnp.einsum('nsd,nde->nse', ctx, wo_ref[...],
                         preferred_element_type=jnp.float32)           # (HB, S, E)
    attn = partial[0:B]
    for h in range(1, H):                                              # H=4 static adds
        attn = attn + partial[h * B:(h + 1) * B]                       # (B, S, E)

    x2 = x.reshape(B * S, E)                                           # leading-dim collapse (free)
    attn2 = attn.reshape(B * S, E) + bo_ref[...]

    # ---------- residual + LayerNorm 1 (dropout1 == identity) ----------
    h1 = x2 + attn2
    mu = jnp.mean(h1, axis=-1, keepdims=True)
    var = jnp.mean(h1 * h1, axis=-1, keepdims=True) - mu * mu          # single-pass variance
    h1 = (h1 - mu) * jax.lax.rsqrt(var + LN_EPS) * g1_ref[...] + be1_ref[...]

    # ---------- feed-forward (dropout == identity) ----------
    f = jnp.dot(h1, w1_ref[...], preferred_element_type=jnp.float32) + b1_ref[...]
    f = jnp.maximum(f, 0.0)
    f = jnp.dot(f, w2_ref[...], preferred_element_type=jnp.float32) + b2_ref[...]

    # ---------- residual + LayerNorm 2 (dropout2 == identity) ----------
    y = h1 + f
    mu = jnp.mean(y, axis=-1, keepdims=True)
    var = jnp.mean(y * y, axis=-1, keepdims=True) - mu * mu
    y = (y - mu) * jax.lax.rsqrt(var + LN_EPS) * g2_ref[...] + be2_ref[...]

    out_ref[...] = y.reshape(B, S, E).astype(out_ref.dtype)


def _prep_weights(params, batch):
    """One-time wrapper-side permutation of the qkv/out-proj weights into the
    (head*batch)-batched layout the kernel's rank-3 dots expect. Also folds the
    1/sqrt(head_dim) attention scale into the Q weights/bias."""
    E, H, hd, B = EMBED, NUM_HEADS, HEAD_DIM, batch
    scale = 1.0 / math.sqrt(hd)

    # qkv_proj column layout (matches .view(B,S,H,3*hd).chunk(3,-1) of the module):
    #   column c -> head h = c // (3*hd), chunk = (c % (3*hd)) // hd  (0=q, 1=k, 2=v)
    w4 = params["wqkv"].reshape(E, H, 3, hd)
    b4 = params["bqkv"].reshape(H, 3, hd)

    def head_batched_w(chunk, s):
        wh = jnp.transpose(w4[:, :, chunk, :], (1, 0, 2)) * s          # (H, E, hd)
        return jnp.broadcast_to(wh[:, None], (H, B, E, hd)).reshape(H * B, E, hd)

    def head_batched_b(chunk, s):
        bh = b4[:, chunk, :] * s                                       # (H, hd)
        return jnp.broadcast_to(bh[:, None, None], (H, B, 1, hd)).reshape(H * B, 1, hd)

    wq = head_batched_w(0, scale)
    wk = head_batched_w(1, 1.0)
    wv = head_batched_w(2, 1.0)
    bq = head_batched_b(0, scale)
    bk = head_batched_b(1, 1.0)
    bv = head_batched_b(2, 1.0)

    # out_proj rows are head-major (row r = h*hd + d), matching concat_heads(ctx).
    wo3 = params["wo"].reshape(H, hd, E)
    wo_hb = jnp.broadcast_to(wo3[:, None], (H, B, hd, E)).reshape(H * B, hd, E)

    return (wq, bq, wk, bk, wv, bv, wo_hb, params["bo"],
            params["w1"], params["b1"], params["w2"], params["b2"],
            params["g1"], params["be1"], params["g2"], params["be2"])


def transformer_encoder_layer(x, params):
    B, S, E = x.shape
    args = (x,) + tuple(_prep_weights(params, B))

    def full_spec(a):
        nd = a.ndim
        return pl.BlockSpec(a.shape, lambda i, _nd=nd: (0,) * _nd)

    return pl.pallas_call(
        _encoder_kernel,
        out_shape=jax.ShapeDtypeStruct((B, S, E), jnp.float32),
        grid_spec=pltpu.PrefetchScalarGridSpec(
            num_scalar_prefetch=0,
            grid=(1,),                       # batch folded into a single grid step
            in_specs=[full_spec(a) for a in args],
            out_specs=pl.BlockSpec((B, S, E), lambda i: (0, 0, 0)),
        ),
        compiler_params=pltpu.CompilerParams(dimension_semantics=("arbitrary",)),
    )(*args)


def make_params(key):
    ks = jax.random.split(key, 8)
    scale = 0.05
    # weights stored as (in_features, out_features)  (i.e. PyTorch W.T)
    return {
        "wqkv": scale * jax.random.normal(ks[0], (EMBED, 3 * EMBED), jnp.float32),
        "bqkv": scale * jax.random.normal(ks[1], (1, 3 * EMBED), jnp.float32),
        "wo":   scale * jax.random.normal(ks[2], (EMBED, EMBED), jnp.float32),
        "bo":   scale * jax.random.normal(ks[3], (1, EMBED), jnp.float32),
        "w1":   scale * jax.random.normal(ks[4], (EMBED, FFN), jnp.float32),
        "b1":   scale * jax.random.normal(ks[5], (1, FFN), jnp.float32),
        "w2":   scale * jax.random.normal(ks[6], (FFN, EMBED), jnp.float32),
        "b2":   scale * jax.random.normal(ks[7], (1, EMBED), jnp.float32),
        "g1":   jnp.ones((1, EMBED), jnp.float32),
        "be1":  jnp.zeros((1, EMBED), jnp.float32),
        "g2":   jnp.ones((1, EMBED), jnp.float32),
        "be2":  jnp.zeros((1, EMBED), jnp.float32),
    }


def reference(x, p):
    """Pure-JAX reference mirroring the PyTorch forward (eval mode)."""
    B, S, E = x.shape
    hd = HEAD_DIM
    qkv = x @ p["wqkv"] + p["bqkv"]                                    # (B,S,3E)
    qkv = qkv.reshape(B, S, NUM_HEADS, 3 * hd).transpose(0, 2, 1, 3)   # (B,H,S,3hd)
    q, k, v = qkv[..., :hd], qkv[..., hd:2 * hd], qkv[..., 2 * hd:]
    scores = jnp.einsum("bhqd,bhkd->bhqk", q, k) / math.sqrt(hd)
    probs = jax.nn.softmax(scores, axis=-1)
    ctx = jnp.einsum("bhqk,bhkd->bhqd", probs, v).transpose(0, 2, 1, 3).reshape(B, S, E)
    attn = ctx @ p["wo"] + p["bo"]

    def ln(z, g, b):
        mu = jnp.mean(z, axis=-1, keepdims=True)
        var = jnp.mean((z - mu) ** 2, axis=-1, keepdims=True)
        return (z - mu) * jax.lax.rsqrt(var + LN_EPS) * g + b

    h = ln(x + attn, p["g1"], p["be1"])
    f = jnp.maximum(h @ p["w1"] + p["b1"], 0.0) @ p["w2"] + p["b2"]
    return ln(h + f, p["g2"], p["be2"])


if __name__ == "__main__":
    key = jax.random.PRNGKey(0)
    kx, kp = jax.random.split(key)
    x = jax.random.normal(kx, (BATCH, SEQ, EMBED), jnp.float32)
    params = make_params(kp)

    out = transformer_encoder_layer(x, params)
    out = jax.block_until_ready(out)

    ref = jax.block_until_ready(reference(x, params))
    # tolerance slightly relaxed vs 1e-4 because the softmax uses the EUP
    # approximate reciprocal (pl.reciprocal(..., approx=True)); real layout /
    # permutation bugs would produce O(0.1..1) errors and still be caught.
    np.testing.assert_allclose(np.asarray(out), np.asarray(ref), rtol=1e-3, atol=1e-3)

    print("KERNEL_OK")
</pallas_src>

<mosaic_0001>
module attributes {stable_mosaic.version = 11 : i64} {
  func.func @_encoder_kernel(%arg0: i32, %arg1: memref<2x8x32xf32, #tpu.memory_space<vmem>>, %arg2: memref<8x32x8xf32, #tpu.memory_space<vmem>>, %arg3: memref<8x1x8xf32, #tpu.memory_space<vmem>>, %arg4: memref<8x32x8xf32, #tpu.memory_space<vmem>>, %arg5: memref<8x1x8xf32, #tpu.memory_space<vmem>>, %arg6: memref<8x32x8xf32, #tpu.memory_space<vmem>>, %arg7: memref<8x1x8xf32, #tpu.memory_space<vmem>>, %arg8: memref<8x8x32xf32, #tpu.memory_space<vmem>>, %arg9: memref<1x32xf32, #tpu.memory_space<vmem>>, %arg10: memref<32x64xf32, #tpu.memory_space<vmem>>, %arg11: memref<1x64xf32, #tpu.memory_space<vmem>>, %arg12: memref<64x32xf32, #tpu.memory_space<vmem>>, %arg13: memref<1x32xf32, #tpu.memory_space<vmem>>, %arg14: memref<1x32xf32, #tpu.memory_space<vmem>>, %arg15: memref<1x32xf32, #tpu.memory_space<vmem>>, %arg16: memref<1x32xf32, #tpu.memory_space<vmem>>, %arg17: memref<1x32xf32, #tpu.memory_space<vmem>>, %arg18: memref<2x8x32xf32, #tpu.memory_space<vmem>>) attributes {dimension_semantics = [#tpu.dimension_semantics<arbitrary>], iteration_bounds = array<i64: 1>, scalar_prefetch = 0 : i64, scratch_operands = 0 : i64, tpu.core_type = #tpu.core_type<tc>, window_params = [{pipeline_mode = #tpu.pipeline_mode<synchronous>, transform_indices = @transform_0, window_bounds = array<i64: 2, 8, 32>}, {pipeline_mode = #tpu.pipeline_mode<synchronous>, transform_indices = @transform_1, window_bounds = array<i64: 8, 32, 8>}, {pipeline_mode = #tpu.pipeline_mode<synchronous>, transform_indices = @transform_2, window_bounds = array<i64: 8, 1, 8>}, {pipeline_mode = #tpu.pipeline_mode<synchronous>, transform_indices = @transform_3, window_bounds = array<i64: 8, 32, 8>}, {pipeline_mode = #tpu.pipeline_mode<synchronous>, transform_indices = @transform_4, window_bounds = array<i64: 8, 1, 8>}, {pipeline_mode = #tpu.pipeline_mode<synchronous>, transform_indices = @transform_5, window_bounds = array<i64: 8, 32, 8>}, {pipeline_mode = #tpu.pipeline_mode<synchronous>, transform_indices = @transform_6, window_bounds = array<i64: 8, 1, 8>}, {pipeline_mode = #tpu.pipeline_mode<synchronous>, transform_indices = @transform_7, window_bounds = array<i64: 8, 8, 32>}, {pipeline_mode = #tpu.pipeline_mode<synchronous>, transform_indices = @transform_8, window_bounds = array<i64: 1, 32>}, {pipeline_mode = #tpu.pipeline_mode<synchronous>, transform_indices = @transform_9, window_bounds = array<i64: 32, 64>}, {pipeline_mode = #tpu.pipeline_mode<synchronous>, transform_indices = @transform_10, window_bounds = array<i64: 1, 64>}, {pipeline_mode = #tpu.pipeline_mode<synchronous>, transform_indices = @transform_11, window_bounds = array<i64: 64, 32>}, {pipeline_mode = #tpu.pipeline_mode<synchronous>, transform_indices = @transform_12, window_bounds = array<i64: 1, 32>}, {pipeline_mode = #tpu.pipeline_mode<synchronous>, transform_indices = @transform_13, window_bounds = array<i64: 1, 32>}, {pipeline_mode = #tpu.pipeline_mode<synchronous>, transform_indices = @transform_14, window_bounds = array<i64: 1, 32>}, {pipeline_mode = #tpu.pipeline_mode<synchronous>, transform_indices = @transform_15, window_bounds = array<i64: 1, 32>}, {pipeline_mode = #tpu.pipeline_mode<synchronous>, transform_indices = @transform_16, window_bounds = array<i64: 1, 32>}, {pipeline_mode = #tpu.pipeline_mode<synchronous>, transform_indices = @transform_17, window_bounds = array<i64: 2, 8, 32>}]} {
    %c0 = arith.constant 0 : index
    %c0_0 = arith.constant 0 : index
    %c0_1 = arith.constant 0 : index
    %0 = vector.load %arg1[%c0, %c0_0, %c0_1] : memref<2x8x32xf32, #tpu.memory_space<vmem>>, vector<2x8x32xf32>
    %1 = tpu.concatenate %0, %0, %0, %0 in 0 : vector<2x8x32xf32>, vector<2x8x32xf32>, vector<2x8x32xf32>, vector<2x8x32xf32> -> vector<8x8x32xf32>
    %c0_2 = arith.constant 0 : index
    %c0_3 = arith.constant 0 : index
    %c0_4 = arith.constant 0 : index
    %2 = vector.load %arg2[%c0_2, %c0_3, %c0_4] : memref<8x32x8xf32, #tpu.memory_space<vmem>>, vector<8x32x8xf32>
    "tpu.trace_start"() <{level = 10 : i32, message = "nse,ned->nsd"}> : () -> ()
    %cst = arith.constant dense<0.000000e+00> : vector<8x8x8xf32>
    %3 = tpu.matmul %1, %2, %cst {dimension_numbers = #tpu.dot_dimension_numbers<[2], [1], [1], [2], [0, 0, 0, 1, 1, 2], [0], [0]>} : vector<8x8x32xf32>, vector<8x32x8xf32>, vector<8x8x8xf32> -> vector<8x8x8xf32>
    "tpu.trace_stop"() : () -> ()
    %c0_5 = arith.constant 0 : index
    %c0_6 = arith.constant 0 : index
    %c0_7 = arith.constant 0 : index
    %4 = vector.load %arg3[%c0_5, %c0_6, %c0_7] : memref<8x1x8xf32, #tpu.memory_space<vmem>>, vector<8x1x8xf32>
    %5 = vector.broadcast %4 : vector<8x1x8xf32> to vector<8x8x8xf32>
    %6 = arith.addf %3, %5 : vector<8x8x8xf32>
    %c0_8 = arith.constant 0 : index
    %c0_9 = arith.constant 0 : index
    %c0_10 = arith.constant 0 : index
    %7 = vector.load %arg4[%c0_8, %c0_9, %c0_10] : memref<8x32x8xf32, #tpu.memory_space<vmem>>, vector<8x32x8xf32>
    "tpu.trace_start"() <{level = 10 : i32, message = "nse,ned->nsd"}> : () -> ()
    %cst_11 = arith.constant dense<0.000000e+00> : vector<8x8x8xf32>
    %8 = tpu.matmul %1, %7, %cst_11 {dimension_numbers = #tpu.dot_dimension_numbers<[2], [1], [1], [2], [0, 0, 0, 1, 1, 2], [0], [0]>} : vector<8x8x32xf32>, vector<8x32x8xf32>, vector<8x8x8xf32> -> vector<8x8x8xf32>
    "tpu.trace_stop"() : () -> ()
    %c0_12 = arith.constant 0 : index
    %c0_13 = arith.constant 0 : index
    %c0_14 = arith.constant 0 : index
    %9 = vector.load %arg5[%c0_12, %c0_13, %c0_14] : memref<8x1x8xf32, #tpu.memory_space<vmem>>, vector<8x1x8xf32>
    %10 = vector.broadcast %9 : vector<8x1x8xf32> to vector<8x8x8xf32>
    %11 = arith.addf %8, %10 : vector<8x8x8xf32>
    %c0_15 = arith.constant 0 : index
    %c0_16 = arith.constant 0 : index
    %c0_17 = arith.constant 0 : index
    %12 = vector.load %arg6[%c0_15, %c0_16, %c0_17] : memref<8x32x8xf32, #tpu.memory_space<vmem>>, vector<8x32x8xf32>
    "tpu.trace_start"() <{level = 10 : i32, message = "nse,ned->nsd"}> : () -> ()
    %cst_18 = arith.constant dense<0.000000e+00> : vector<8x8x8xf32>
    %13 = tpu.matmul %1, %12, %cst_18 {dimension_numbers = #tpu.dot_dimension_numbers<[2], [1], [1], [2], [0, 0, 0, 1, 1, 2], [0], [0]>} : vector<8x8x32xf32>, vector<8x32x8xf32>, vector<8x8x8xf32> -> vector<8x8x8xf32>
    "tpu.trace_stop"() : () -> ()
    %c0_19 = arith.constant 0 : index
    %c0_20 = arith.constant 0 : index
    %c0_21 = arith.constant 0 : index
    %14 = vector.load %arg7[%c0_19, %c0_20, %c0_21] : memref<8x1x8xf32, #tpu.memory_space<vmem>>, vector<8x1x8xf32>
    %15 = vector.broadcast %14 : vector<8x1x8xf32> to vector<8x8x8xf32>
    %16 = arith.addf %13, %15 : vector<8x8x8xf32>
    "tpu.trace_start"() <{level = 10 : i32, message = "nqd,nkd->nqk"}> : () -> ()
    %cst_22 = arith.constant dense<0.000000e+00> : vector<8x8x8xf32>
    %17 = tpu.matmul %6, %11, %cst_22 {dimension_numbers = #tpu.dot_dimension_numbers<[2], [2], [1], [1], [0, 0, 0, 1, 1, 1], [0], [0]>} : vector<8x8x8xf32>, vector<8x8x8xf32>, vector<8x8x8xf32> -> vector<8x8x8xf32>
    "tpu.trace_stop"() : () -> ()
    %cst_23 = arith.constant dense<0xFF800000> : vector<8x8xf32>
    %18 = vector.multi_reduction <maximumf>, %17, %cst_23 [2] : vector<8x8x8xf32> to vector<8x8xf32>
    %19 = vector.shape_cast %18 : vector<8x8xf32> to vector<8x8x1xf32>
    %20 = vector.broadcast %19 : vector<8x8x1xf32> to vector<8x8x8xf32>
    %21 = arith.subf %17, %20 : vector<8x8x8xf32>
    %22 = math.exp %21 : vector<8x8x8xf32>
    %cst_24 = arith.constant dense<0.000000e+00> : vector<8x8xf32>
    %23 = vector.multi_reduction <add>, %22, %cst_24 [2] : vector<8x8x8xf32> to vector<8x8xf32>
    %24 = vector.shape_cast %23 : vector<8x8xf32> to vector<8x8x1xf32>
    %25 = tpu.reciprocal %24 {approx = true} : vector<8x8x1xf32> -> vector<8x8x1xf32>
    %26 = vector.broadcast %25 : vector<8x8x1xf32> to vector<8x8x8xf32>
    %27 = arith.mulf %22, %26 : vector<8x8x8xf32>
    "tpu.trace_start"() <{level = 10 : i32, message = "nqk,nkd->nqd"}> : () -> ()
    %cst_25 = arith.constant dense<0.000000e+00> : vector<8x8x8xf32>
    %28 = tpu.matmul %27, %16, %cst_25 {dimension_numbers = #tpu.dot_dimension_numbers<[2], [1], [1], [2], [0, 0, 0, 1, 1, 2], [0], [0]>} : vector<8x8x8xf32>, vector<8x8x8xf32>, vector<8x8x8xf32> -> vector<8x8x8xf32>
    "tpu.trace_stop"() : () -> ()
    %c0_26 = arith.constant 0 : index
    %c0_27 = arith.constant 0 : index
    %c0_28 = arith.constant 0 : index
    %29 = vector.load %arg8[%c0_26, %c0_27, %c0_28] : memref<8x8x32xf32, #tpu.memory_space<vmem>>, vector<8x8x32xf32>
    "tpu.trace_start"() <{level = 10 : i32, message = "nsd,nde->nse"}> : () -> ()
    %cst_29 = arith.constant dense<0.000000e+00> : vector<8x8x32xf32>
    %30 = tpu.matmul %28, %29, %cst_29 {dimension_numbers = #tpu.dot_dimension_numbers<[2], [1], [1], [2], [0, 0, 0, 1, 1, 2], [0], [0]>} : vector<8x8x8xf32>, vector<8x8x32xf32>, vector<8x8x32xf32> -> vector<8x8x32xf32>
    "tpu.trace_stop"() : () -> ()
    %31 = vector.extract_strided_slice %30 {offsets = [0, 0, 0], sizes = [2, 8, 32], strides = [1, 1, 1]} : vector<8x8x32xf32> to vector<2x8x32xf32>
    %32 = vector.extract_strided_slice %30 {offsets = [2, 0, 0], sizes = [2, 8, 32], strides = [1, 1, 1]} : vector<8x8x32xf32> to vector<2x8x32xf32>
    %33 = arith.addf %31, %32 : vector<2x8x32xf32>
    %34 = vector.extract_strided_slice %30 {offsets = [4, 0, 0], sizes = [2, 8, 32], strides = [1, 1, 1]} : vector<8x8x32xf32> to vector<2x8x32xf32>
    %35 = arith.addf %33, %34 : vector<2x8x32xf32>
    %36 = vector.extract_strided_slice %30 {offsets = [6, 0, 0], sizes = [2, 8, 32], strides = [1, 1, 1]} : vector<8x8x32xf32> to vector<2x8x32xf32>
    %37 = arith.addf %35, %36 : vector<2x8x32xf32>
    %38 = vector.shape_cast %0 : vector<2x8x32xf32> to vector<16x32xf32>
    %39 = vector.shape_cast %37 : vector<2x8x32xf32> to vector<16x32xf32>
    %c0_30 = arith.constant 0 : index
    %c0_31 = arith.constant 0 : index
    %40 = vector.load %arg9[%c0_30, %c0_31] : memref<1x32xf32, #tpu.memory_space<vmem>>, vector<1x32xf32>
    %41 = vector.broadcast %40 : vector<1x32xf32> to vector<16x32xf32>
    %42 = arith.addf %39, %41 : vector<16x32xf32>
    %43 = arith.addf %38, %42 : vector<16x32xf32>
    %cst_32 = arith.constant dense<0.000000e+00> : vector<16xf32>
    %44 = vector.multi_reduction <add>, %43, %cst_32 [1] : vector<16x32xf32> to vector<16xf32>
    %45 = vector.shape_cast %44 : vector<16xf32> to vector<16x1xf32>
    %cst_33 = arith.constant 3.200000e+01 : f32
    %46 = vector.broadcast %cst_33 : f32 to vector<16x1xf32>
    %47 = arith.divf %45, %46 : vector<16x1xf32>
    %48 = arith.mulf %43, %43 : vector<16x32xf32>
    %cst_34 = arith.constant dense<0.000000e+00> : vector<16xf32>
    %49 = vector.multi_reduction <add>, %48, %cst_34 [1] : vector<16x32xf32> to vector<16xf32>
    %50 = vector.shape_cast %49 : vector<16xf32> to vector<16x1xf32>
    %cst_35 = arith.constant 3.200000e+01 : f32
    %51 = vector.broadcast %cst_35 : f32 to vector<16x1xf32>
    %52 = arith.divf %50, %51 : vector<16x1xf32>
    %53 = arith.mulf %47, %47 : vector<16x1xf32>
    %54 = arith.subf %52, %53 : vector<16x1xf32>
    %55 = vector.broadcast %47 : vector<16x1xf32> to vector<16x32xf32>
    %56 = arith.subf %43, %55 : vector<16x32xf32>
    %cst_36 = arith.constant 9.99999974E-6 : f32
    %57 = vector.broadcast %cst_36 : f32 to vector<16x1xf32>
    %58 = arith.addf %54, %57 : vector<16x1xf32>
    %59 = math.rsqrt %58 : vector<16x1xf32>
    %60 = vector.broadcast %59 : vector<16x1xf32> to vector<16x32xf32>
    %61 = arith.mulf %56, %60 : vector<16x32xf32>
    %c0_37 = arith.constant 0 : index
    %c0_38 = arith.constant 0 : index
    %62 = vector.load %arg14[%c0_37, %c0_38] : memref<1x32xf32, #tpu.memory_space<vmem>>, vector<1x32xf32>
    %63 = vector.broadcast %62 : vector<1x32xf32> to vector<16x32xf32>
    %64 = arith.mulf %61, %63 : vector<16x32xf32>
    %c0_39 = arith.constant 0 : index
    %c0_40 = arith.constant 0 : index
    %65 = vector.load %arg15[%c0_39, %c0_40] : memref<1x32xf32, #tpu.memory_space<vmem>>, vector<1x32xf32>
    %66 = vector.broadcast %65 : vector<1x32xf32> to vector<16x32xf32>
    %67 = arith.addf %64, %66 : vector<16x32xf32>
    %c0_41 = arith.constant 0 : index
    %c0_42 = arith.constant 0 : index
    %68 = vector.load %arg10[%c0_41, %c0_42] : memref<32x64xf32, #tpu.memory_space<vmem>>, vector<32x64xf32>
    %cst_43 = arith.constant dense<0.000000e+00> : vector<16x64xf32>
    %69 = tpu.matmul %67, %68, %cst_43 {dimension_numbers = #tpu.dot_dimension_numbers<[1], [0], [0], [1], [0, 0, 1, 1], [], []>} : vector<16x32xf32>, vector<32x64xf32>, vector<16x64xf32> -> vector<16x64xf32>
    %c0_44 = arith.constant 0 : index
    %c0_45 = arith.constant 0 : index
    %70 = vector.load %arg11[%c0_44, %c0_45] : memref<1x64xf32, #tpu.memory_space<vmem>>, vector<1x64xf32>
    %71 = vector.broadcast %70 : vector<1x64xf32> to vector<16x64xf32>
    %72 = arith.addf %69, %71 : vector<16x64xf32>
    %cst_46 = arith.constant 0.000000e+00 : f32
    %73 = vector.broadcast %cst_46 : f32 to vector<16x64xf32>
    %74 = arith.maximumf %72, %73 : vector<16x64xf32>
    %c0_47 = arith.constant 0 : index
    %c0_48 = arith.constant 0 : index
    %75 = vector.load %arg12[%c0_47, %c0_48] : memref<64x32xf32, #tpu.memory_space<vmem>>, vector<64x32xf32>
    %cst_49 = arith.constant dense<0.000000e+00> : vector<16x32xf32>
    %76 = tpu.matmul %74, %75, %cst_49 {dimension_numbers = #tpu.dot_dimension_numbers<[1], [0], [0], [1], [0, 0, 1, 1], [], []>} : vector<16x64xf32>, vector<64x32xf32>, vector<16x32xf32> -> vector<16x32xf32>
    %c0_50 = arith.constant 0 : index
    %c0_51 = arith.constant 0 : index
    %77 = vector.load %arg13[%c0_50, %c0_51] : memref<1x32xf32, #tpu.memory_space<vmem>>, vector<1x32xf32>
    %78 = vector.broadcast %77 : vector<1x32xf32> to vector<16x32xf32>
    %79 = arith.addf %76, %78 : vector<16x32xf32>
    %80 = arith.addf %67, %79 : vector<16x32xf32>
    %cst_52 = arith.constant dense<0.000000e+00> : vector<16xf32>
    %81 = vector.multi_reduction <add>, %80, %cst_52 [1] : vector<16x32xf32> to vector<16xf32>
    %82 = vector.shape_cast %81 : vector<16xf32> to vector<16x1xf32>
    %cst_53 = arith.constant 3.200000e+01 : f32
    %83 = vector.broadcast %cst_53 : f32 to vector<16x1xf32>
    %84 = arith.divf %82, %83 : vector<16x1xf32>
    %85 = arith.mulf %80, %80 : vector<16x32xf32>
    %cst_54 = arith.constant dense<0.000000e+00> : vector<16xf32>
    %86 = vector.multi_reduction <add>, %85, %cst_54 [1] : vector<16x32xf32> to vector<16xf32>
    %87 = vector.shape_cast %86 : vector<16xf32> to vector<16x1xf32>
    %cst_55 = arith.constant 3.200000e+01 : f32
    %88 = vector.broadcast %cst_55 : f32 to vector<16x1xf32>
    %89 = arith.divf %87, %88 : vector<16x1xf32>
    %90 = arith.mulf %84, %84 : vector<16x1xf32>
    %91 = arith.subf %89, %90 : vector<16x1xf32>
    %92 = vector.broadcast %84 : vector<16x1xf32> to vector<16x32xf32>
    %93 = arith.subf %80, %92 : vector<16x32xf32>
    %cst_56 = arith.constant 9.99999974E-6 : f32
    %94 = vector.broadcast %cst_56 : f32 to vector<16x1xf32>
    %95 = arith.addf %91, %94 : vector<16x1xf32>
    %96 = math.rsqrt %95 : vector<16x1xf32>
    %97 = vector.broadcast %96 : vector<16x1xf32> to vector<16x32xf32>
    %98 = arith.mulf %93, %97 : vector<16x32xf32>
    %c0_57 = arith.constant 0 : index
    %c0_58 = arith.constant 0 : index
    %99 = vector.load %arg16[%c0_57, %c0_58] : memref<1x32xf32, #tpu.memory_space<vmem>>, vector<1x32xf32>
    %100 = vector.broadcast %99 : vector<1x32xf32> to vector<16x32xf32>
    %101 = arith.mulf %98, %100 : vector<16x32xf32>
    %c0_59 = arith.constant 0 : index
    %c0_60 = arith.constant 0 : index
    %102 = vector.load %arg17[%c0_59, %c0_60] : memref<1x32xf32, #tpu.memory_space<vmem>>, vector<1x32xf32>
    %103 = vector.broadcast %102 : vector<1x32xf32> to vector<16x32xf32>
    %104 = arith.addf %101, %103 : vector<16x32xf32>
    %105 = vector.shape_cast %104 : vector<16x32xf32> to vector<2x8x32xf32>
    %c0_61 = arith.constant 0 : index
    %c0_62 = arith.constant 0 : index
    %c0_63 = arith.constant 0 : index
    %106 = vector.load %arg18[%c0_61, %c0_62, %c0_63] : memref<2x8x32xf32, #tpu.memory_space<vmem>>, vector<2x8x32xf32>
    tpu.vector_store %arg18[%c0_61, %c0_62, %c0_63], %105 {strides = array<i32>} : memref<2x8x32xf32, #tpu.memory_space<vmem>>, vector<2x8x32xf32>,
    return
  }
  func.func @transform_0(%arg0: i32) -> (i32, i32, i32) {
    %c0_i32 = arith.constant 0 : i32
    %c0_i32_0 = arith.constant 0 : i32
    %c0_i32_1 = arith.constant 0 : i32
    %c0_i32_2 = arith.constant 0 : i32
    return %c0_i32, %c0_i32_0, %c0_i32_1 : i32, i32, i32
  }
  func.func @transform_1(%arg0: i32) -> (i32, i32, i32) {
    %c0_i32 = arith.constant 0 : i32
    %c0_i32_0 = arith.constant 0 : i32
    %c0_i32_1 = arith.constant 0 : i32
    %c0_i32_2 = arith.constant 0 : i32
    return %c0_i32, %c0_i32_0, %c0_i32_1 : i32, i32, i32
  }
  func.func @transform_2(%arg0: i32) -> (i32, i32, i32) {
    %c0_i32 = arith.constant 0 : i32
    %c0_i32_0 = arith.constant 0 : i32
    %c0_i32_1 = arith.constant 0 : i32
    %c0_i32_2 = arith.constant 0 : i32
    return %c0_i32, %c0_i32_0, %c0_i32_1 : i32, i32, i32
  }
  func.func @transform_3(%arg0: i32) -> (i32, i32, i32) {
    %c0_i32 = arith.constant 0 : i32
    %c0_i32_0 = arith.constant 0 : i32
    %c0_i32_1 = arith.constant 0 : i32
    %c0_i32_2 = arith.constant 0 : i32
    return %c0_i32, %c0_i32_0, %c0_i32_1 : i32, i32, i32
  }
  func.func @transform_4(%arg0: i32) -> (i32, i32, i32) {
    %c0_i32 = arith.constant 0 : i32
    %c0_i32_0 = arith.constant 0 : i32
    %c0_i32_1 = arith.constant 0 : i32
    %c0_i32_2 = arith.constant 0 : i32
    return %c0_i32, %c0_i32_0, %c0_i32_1 : i32, i32, i32
  }
  func.func @transform_5(%arg0: i32) -> (i32, i32, i32) {
    %c0_i32 = arith.constant 0 : i32
    %c0_i32_0 = arith.constant 0 : i32
    %c0_i32_1 = arith.constant 0 : i32
    %c0_i32_2 = arith.constant 0 : i32
    return %c0_i32, %c0_i32_0, %c0_i32_1 : i32, i32, i32
  }
  func.func @transform_6(%arg0: i32) -> (i32, i32, i32) {
    %c0_i32 = arith.constant 0 : i32
    %c0_i32_0 = arith.constant 0 : i32
    %c0_i32_1 = arith.constant 0 : i32
    %c0_i32_2 = arith.constant 0 : i32
    return %c0_i32, %c0_i32_0, %c0_i32_1 : i32, i32, i32
  }
  func.func @transform_7(%arg0: i32) -> (i32, i32, i32) {
    %c0_i32 = arith.constant 0 : i32
    %c0_i32_0 = arith.constant 0 : i32
    %c0_i32_1 = arith.constant 0 : i32
    %c0_i32_2 = arith.constant 0 : i32
    return %c0_i32, %c0_i32_0, %c0_i32_1 : i32, i32, i32
  }
  func.func @transform_8(%arg0: i32) -> (i32, i32) {
    %c0_i32 = arith.constant 0 : i32
    %c0_i32_0 = arith.constant 0 : i32
    %c0_i32_1 = arith.constant 0 : i32
    return %c0_i32, %c0_i32_0 : i32, i32
  }
  func.func @transform_9(%arg0: i32) -> (i32, i32) {
    %c0_i32 = arith.constant 0 : i32
    %c0_i32_0 = arith.constant 0 : i32
    %c0_i32_1 = arith.constant 0 : i32
    return %c0_i32, %c0_i32_0 : i32, i32
  }
  func.func @transform_10(%arg0: i32) -> (i32, i32) {
    %c0_i32 = arith.constant 0 : i32
    %c0_i32_0 = arith.constant 0 : i32
    %c0_i32_1 = arith.constant 0 : i32
    return %c0_i32, %c0_i32_0 : i32, i32
  }
  func.func @transform_11(%arg0: i32) -> (i32, i32) {
    %c0_i32 = arith.constant 0 : i32
    %c0_i32_0 = arith.constant 0 : i32
    %c0_i32_1 = arith.constant 0 : i32
    return %c0_i32, %c0_i32_0 : i32, i32
  }
  func.func @transform_12(%arg0: i32) -> (i32, i32) {
    %c0_i32 = arith.constant 0 : i32
    %c0_i32_0 = arith.constant 0 : i32
    %c0_i32_1 = arith.constant 0 : i32
    return %c0_i32, %c0_i32_0 : i32, i32
  }
  func.func @transform_13(%arg0: i32) -> (i32, i32) {
    %c0_i32 = arith.constant 0 : i32
    %c0_i32_0 = arith.constant 0 : i32
    %c0_i32_1 = arith.constant 0 : i32
    return %c0_i32, %c0_i32_0 : i32, i32
  }
  func.func @transform_14(%arg0: i32) -> (i32, i32) {
    %c0_i32 = arith.constant 0 : i32
    %c0_i32_0 = arith.constant 0 : i32
    %c0_i32_1 = arith.constant 0 : i32
    return %c0_i32, %c0_i32_0 : i32, i32
  }
  func.func @transform_15(%arg0: i32) -> (i32, i32) {
    %c0_i32 = arith.constant 0 : i32
    %c0_i32_0 = arith.constant 0 : i32
    %c0_i32_1 = arith.constant 0 : i32
    return %c0_i32, %c0_i32_0 : i32, i32
  }
  func.func @transform_16(%arg0: i32) -> (i32, i32) {
    %c0_i32 = arith.constant 0 : i32
    %c0_i32_0 = arith.constant 0 : i32
    %c0_i32_1 = arith.constant 0 : i32
    return %c0_i32, %c0_i32_0 : i32, i32
  }
  func.func @transform_17(%arg0: i32) -> (i32, i32, i32) {
    %c0_i32 = arith.constant 0 : i32
    %c0_i32_0 = arith.constant 0 : i32
    %c0_i32_1 = arith.constant 0 : i32
    %c0_i32_2 = arith.constant 0 : i32
    return %c0_i32, %c0_i32_0, %c0_i32_1 : i32, i32, i32
  }
}

</mosaic_0001>

<bundles_post_ra>
// kernel: tpu_custom_call.1
= control target key start
LH: loop header
LB: loop body
LE: loop exit
PB: predicated region body
PF: predicated region fallthrough
CT: control target
= control target key end

     0   :  { %s6018_s0 = inlined_call_operand.vmem [shape: f32[2,8,32], index: 0, kind: input, shape index: {}]   ;;  %s6019_s1 = inlined_call_operand.vmem [shape: f32[8,32,8], index: 1, kind: input, shape index: {}]   ;;  %s6020_s2 = inlined_call_operand.vmem [shape: f32[8,1,8], index: 2, kind: input, shape index: {}]   ;;  %s6021_s3 = inlined_call_operand.vmem [shape: f32[8,32,8], index: 3, kind: input, shape index: {}]   ;;  %s6022_s4 = inlined_call_operand.vmem [shape: f32[8,1,8], index: 4, kind: input, shape index: {}]   ;;  %s6023_s5 = inlined_call_operand.vmem [shape: f32[8,32,8], index: 5, kind: input, shape index: {}]   ;;  %s6024_s6 = inlined_call_operand.vmem [shape: f32[8,1,8], index: 6, kind: input, shape index: {}]   ;;  %s6025_s7 = inlined_call_operand.vmem [shape: f32[8,8,32], index: 7, kind: input, shape index: {}]   ;;  %s6026_s8 = inlined_call_operand.vmem [shape: f32[1,32], index: 8, kind: input, shape index: {}]   ;;  %s6027_s9 = inlined_call_operand.vmem [shape: f32[32,64], index: 9, kind: input, shape index: {}]   ;;  %s6028_s10 = inlined_call_operand.vmem [shape: f32[1,64], index: 10, kind: input, shape index: {}]   ;;  %s6029_s11 = inlined_call_operand.vmem [shape: f32[64,32], index: 11, kind: input, shape index: {}]   ;;  %s6030_s12 = inlined_call_operand.vmem [shape: f32[1,32], index: 12, kind: input, shape index: {}]   ;;  %s6031_s13 = inlined_call_operand.vmem [shape: f32[1,32], index: 13, kind: input, shape index: {}]   ;;  %s6032_s14 = inlined_call_operand.vmem [shape: f32[1,32], index: 14, kind: input, shape index: {}]   ;;  %s6033_s15 = inlined_call_operand.vmem [shape: f32[1,32], index: 15, kind: input, shape index: {}]   ;;  %s6034_s16 = inlined_call_operand.vmem [shape: f32[1,32], index: 16, kind: input, shape index: {}]   ;;  %s6035_s17 = inlined_call_operand.hbm [shape: f32[2,8,32], index: 17, kind: output, shape index: {}]  }
   0x1   :  { %6038 = sst [smem:[#allocation5_spill]] %s6018_s0 }
   0x2   :  { %6039 = sst [smem:[#allocation6_spill]] %s6019_s1 }
   0x3   :  { %s6040_s26 = sld [smem:[#allocation6_spill]]  ;;  %v5137_v3 = vmov 0.0|0.0   ;;  %vm5138_vm0 = vmmov 0   ;;  %v5139_v11 = vmov 0.0   ;;  %s6041_s22 = sld [smem:[#allocation5_spill]]  ;;  %vm147_vm1 = vcmask 261120  }
   0x4   :  { %4897 = vmatprep.subr.bf16.mxu0 %v5137_v3  ;;  %4903 = vmatprep.subr.bf16.mxu1 %v5137_v3 }
   0x5   :  { %4491 = vmatprep.mubr.msk.f32.mxu0 %vm5138_vm0, %v5139_v11  ;;  %4502 = vmatprep.mubr.msk.f32.mxu1 %vm5138_vm0, %v5139_v11 }
   0x9   :  { %v59_v0 = vld [vmem:[%s6040_s26] sm:$0xff]  ;;  %v60_v1 = vld [vmem:[%s6040_s26 + $0x8] sm:$0xff]  ;;  %v61_v6 = vld [vmem:[%s6040_s26 + $0x10] sm:$0xff] }
   0xa   :  { %v63_v2 = vld [vmem:[%s6040_s26 + $0x20] sm:$0xff]  ;;  %v4898_v4 = vpack.c.bf16 %v60_v1, %v59_v0  ;;  %v64_v5 = vld [vmem:[%s6040_s26 + $0x28] sm:$0xff]  ;;  %v62_v7 = vld [vmem:[%s6040_s26 + $0x18] sm:$0xff] }
   0xb   :  { %v4904_v8 = vpack.c.bf16 %v64_v5, %v63_v2  ;;  %v65_v9 = vld [vmem:[%s6040_s26 + $0x30] sm:$0xff]  ;;  %v66_v10 = vld [vmem:[%s6040_s26 + $0x38] sm:$0xff]  ;;  %v4901_v12 = vpack.c.bf16 %v62_v7, %v61_v6  ;;  %v67_v14 = vld [vmem:[%s6040_s26 + $0x40] sm:$0xff] }
   0xc   :  { %4899 = vmatpush3.bf16.msra.mxu0 %v4898_v4  ;;  %v4907_v13 = vpack.c.bf16 %v66_v10, %v65_v9  ;;  %v68_v15 = vld [vmem:[%s6040_s26 + $0x48] sm:$0xff]  ;;  %v71_v16 = vld [vmem:[%s6040_s26 + $0x60] sm:$0xff]  ;;  %v69_v22 = vld [vmem:[%s6040_s26 + $0x50] sm:$0xff] }
   0xd   :  { %4905 = vmatpush3.bf16.msra.mxu1 %v4904_v8  ;;  %4900 = vmatprep.subr.bf16.mxu0 %v5137_v3  ;;  %v72_v17 = vld [vmem:[%s6040_s26 + $0x68] sm:$0xff]  ;;  %v5280_v18 = vld [vmem:[%s6041_s22] sm:$0xff]  ;;  %v4910_v19 = vpack.c.bf16 %v68_v15, %v67_v14  ;;  %v70_v23 = vld [vmem:[%s6040_s26 + $0x58] sm:$0xff] }
   0xe   :  { %4906 = vmatprep.subr.bf16.mxu1 %v5137_v3  ;;  %v5286_v20 = vld [vmem:[%s6041_s22 + $0x8] sm:$0xff]  ;;  %v4916_v21 = vpack.c.bf16 %v72_v17, %v71_v16  ;;  %v73_v24 = vld [vmem:[%s6040_s26 + $0x70] sm:$0xff]  ;;  %v74_v25 = vld [vmem:[%s6040_s26 + $0x78] sm:$0xff]  ;;  %v4913_v26 = vpack.c.bf16 %v70_v23, %v69_v22 }
   0xf   :  { %v4919_v27 = vpack.c.bf16 %v74_v25, %v73_v24  ;;  %v75_v28 = vld [vmem:[%s6040_s26 + $0x80] sm:$0xff]  ;;  %v76_v29 = vld [vmem:[%s6040_s26 + $0x88] sm:$0xff]  ;;  %v77_v34 = vld [vmem:[%s6040_s26 + $0x90] sm:$0xff] }
  0x10   :  { %4902 = vmatpush3.bf16.msra.mxu0 %v4901_v12  ;;  %v79_v30 = vld [vmem:[%s6040_s26 + $0xa0] sm:$0xff]  ;;  %v80_v31 = vld [vmem:[%s6040_s26 + $0xa8] sm:$0xff]  ;;  %v4922_v32 = vpack.c.bf16 %v76_v29, %v75_v28  ;;  %v78_v35 = vld [vmem:[%s6040_s26 + $0x98] sm:$0xff] }
  0x11   :  { %4908 = vmatpush3.bf16.msra.mxu1 %v4907_v13  ;;  %4909 = vmatprep.subr.bf16.mxu0 %v5137_v3  ;;  %v4928_v33 = vpack.c.bf16 %v80_v31, %v79_v30  ;;  %v81_v36 = vld [vmem:[%s6040_s26 + $0xb0] sm:$0xff]  ;;  %v82_v37 = vld [vmem:[%s6040_s26 + $0xb8] sm:$0xff]  ;;  %v4925_v38 = vpack.c.bf16 %v78_v35, %v77_v34  ;;  %v83_v40 = vld [vmem:[%s6040_s26 + $0xc0] sm:$0xff] }
  0x12   :  { %4915 = vmatprep.subr.bf16.mxu1 %v5137_v3  ;;  %v4931_v39 = vpack.c.bf16 %v82_v37, %v81_v36  ;;  %v84_v41 = vld [vmem:[%s6040_s26 + $0xc8] sm:$0xff]  ;;  %v87_v42 = vld [vmem:[%s6040_s26 + $0xe0] sm:$0xff] }
  0x13   :  { %4492 = vmatmul.mubr.msk.f32.vlgmr.msra.gmra.mrb[0].mxu0 %vm147_vm1, %v5280_v18  ;;  %v88_v43 = vld [vmem:[%s6040_s26 + $0xe8] sm:$0xff]  ;;  %v4934_v44 = vpack.c.bf16 %v84_v41, %v83_v40 }
  0x14   :  { %4503 = vmatmul.mubr.msk.f32.vlgmr.msra.gmra.mrb[0].mxu1 %vm147_vm1, %v5286_v20  ;;  %4911 = vmatpush3.bf16.msra.mxu0 %v4910_v19 }
  0x15   :  { %4917 = vmatpush3.bf16.msra.mxu1 %v4916_v21  ;;  %4912 = vmatprep.subr.bf16.mxu0 %v5137_v3 }
  0x16   :  { %4918 = vmatprep.subr.bf16.mxu1 %v5137_v3  ;;  %4513 = vmatprep.mubr.msk.f32.mxu0 %vm5138_vm0, %v5139_v11 }
  0x17   :  { %4524 = vmatprep.mubr.msk.f32.mxu1 %vm5138_vm0, %v5139_v11 }
  0x18   :  { %4914 = vmatpush3.bf16.msra.mxu0 %v4913_v26 }
  0x19   :  { %4920 = vmatpush3.bf16.msra.mxu1 %v4919_v27  ;;  %4921 = vmatprep.subr.bf16.mxu0 %v5137_v3 }
  0x1a   :  { %4927 = vmatprep.subr.bf16.mxu1 %v5137_v3 }
  0x1b   :  { %4514 = vmatmul.mubr.msk.f32.vlgmr.msra.gmra.mrb[2].mxu0 %vm147_vm1, %v5280_v18 }
  0x1c   :  { %4525 = vmatmul.mubr.msk.f32.vlgmr.msra.gmra.mrb[2].mxu1 %vm147_vm1, %v5286_v20  ;;  %4923 = vmatpush3.bf16.msra.mxu0 %v4922_v32 }
  0x1d   :  { %4929 = vmatpush3.bf16.msra.mxu1 %v4928_v33  ;;  %4924 = vmatprep.subr.bf16.mxu0 %v5137_v3 }
  0x1e   :  { %4930 = vmatprep.subr.bf16.mxu1 %v5137_v3  ;;  %4535 = vmatprep.mubr.msk.f32.mxu0 %vm5138_vm0, %v5139_v11 }
  0x1f   :  { %4546 = vmatprep.mubr.msk.f32.mxu1 %vm5138_vm0, %v5139_v11 }
  0x20   :  { %4926 = vmatpush3.bf16.msra.mxu0 %v4925_v38 }
  0x21   :  { %22 = vsyncpa [#allocation3], 0  ;;  %4932 = vmatpush3.bf16.msra.mxu1 %v4931_v39  ;;  %4933 = vmatprep.subr.bf16.mxu0 %v5137_v3  ;;  %v4940_v45 = vpack.c.bf16 %v88_v43, %v87_v42  ;;  %v85_v46 = vld [vmem:[%s6040_s26 + $0xd0] sm:$0xff]  ;;  %v86_v47 = vld [vmem:[%s6040_s26 + $0xd8] sm:$0xff]  ;;  %vm2010_vm2 = vcmask 64512   ;;  %vm4058_vm3 = vcmask 523264  }
  0x22   :  { %4939 = vmatprep.subr.bf16.mxu1 %v5137_v3  ;;  %v89_v48 = vld [vmem:[%s6040_s26 + $0xf0] sm:$0xff]  ;;  %v90_v49 = vld [vmem:[%s6040_s26 + $0xf8] sm:$0xff]  ;;  %v4937_v50 = vpack.c.bf16 %v86_v47, %v85_v46  ;;  %v714_v52 = vld [vmem:[%s6021_s3] sm:$0xff]  ;;  %s5140_s25 = smov [#allocation2]  }
  0x23   :  { %4536 = vmatmul.mubr.msk.f32.vlgmr.msra.gmra.mrb[4].mxu0 %vm147_vm1, %v5280_v18  ;;  %v4943_v51 = vpack.c.bf16 %v90_v49, %v89_v48  ;;  %v715_v53 = vld [vmem:[%s6021_s3 + $0x8] sm:$0xff]  ;;  %v718_v54 = vld [vmem:[%s6021_s3 + $0x20] sm:$0xff]  ;;  %v716_v58 = vld [vmem:[%s6021_s3 + $0x10] sm:$0xff]  ;;  %s4197_s27 = sshll.u32 %s5140_s25, 4  ;;  %s4198_s27 = int_to_ptr.vmem [resolvable:$true] %s4197_s27 }
  0x24   :  { %4547 = vmatmul.mubr.msk.f32.vlgmr.msra.gmra.mrb[4].mxu1 %vm147_vm1, %v5286_v20  ;;  %4935 = vmatpush3.bf16.msra.mxu0 %v4934_v44  ;;  %v719_v55 = vld [vmem:[%s6021_s3 + $0x28] sm:$0xff]  ;;  %v4946_v56 = vpack.c.bf16 %v715_v53, %v714_v52  ;;  %v717_v59 = vld [vmem:[%s6021_s3 + $0x18] sm:$0xff]  ;;  %v720_v60 = vld [vmem:[%s6021_s3 + $0x30] sm:$0xff]  ;;  %s5113_s28 = scalar_lea.vmem %s4198_s27, 256  ;;  %p5118_p1 = scmp.lt.s32.totalorder %s4198_s27, %s4198_s27 }
  0x25   :  { %4941 = vmatpush3.bf16.msra.mxu1 %v4940_v45  ;;  %4936 = vmatprep.subr.bf16.mxu0 %v5137_v3  ;;  %v4952_v57 = vpack.c.bf16 %v719_v55, %v718_v54  ;;  %v721_v61 = vld [vmem:[%s6021_s3 + $0x38] sm:$0xff]  ;;  %v4949_v62 = vpack.c.bf16 %v717_v59, %v716_v58  ;;  %v722_v0 = vld [vmem:[%s6021_s3 + $0x40] sm:$0xff]  ;;  %v723_v1 = vld [vmem:[%s6021_s3 + $0x48] sm:$0xff]  ;;  %p5114_p0 = scmp.ne.s32.totalorder %s4198_s27, %s5113_s28  ;;  %p5119_p2 = scmp.lt.s32.totalorder %s5113_s28, %s5113_s28 }
  0x26   :  { %4942 = vmatprep.subr.bf16.mxu1 %v5137_v3  ;;  %4557 = vmatprep.mubr.msk.f32.mxu0 %vm5138_vm0, %v5139_v11  ;;  %v4955_v63 = vpack.c.bf16 %v721_v61, %v720_v60  ;;  %v726_v2 = vld [vmem:[%s6021_s3 + $0x60] sm:$0xff]  ;;  %v727_v4 = vld [vmem:[%s6021_s3 + $0x68] sm:$0xff]  ;;  %v4958_v5 = vpack.c.bf16 %v723_v1, %v722_v0  ;;  %v724_v7 = vld [vmem:[%s6021_s3 + $0x50] sm:$0xff] }
  0x27   :  { %4568 = vmatprep.mubr.msk.f32.mxu1 %vm5138_vm0, %v5139_v11  ;;  %v4964_v6 = vpack.c.bf16 %v727_v4, %v726_v2  ;;  %v725_v8 = vld [vmem:[%s6021_s3 + $0x58] sm:$0xff]  ;;  %v728_v9 = vld [vmem:[%s6021_s3 + $0x70] sm:$0xff]  ;;  %v730_v14 = vld [vmem:[%s6021_s3 + $0x80] sm:$0xff]  ;;  %p5120_p3 = por %p5119_p2, %p5118_p1 }
  0x28   :  { %4938 = vmatpush3.bf16.msra.mxu0 %v4937_v50  ;;  %v729_v10 = vld [vmem:[%s6021_s3 + $0x78] sm:$0xff]  ;;  %v4961_v12 = vpack.c.bf16 %v725_v8, %v724_v7  ;;  %v731_v15 = vld [vmem:[%s6021_s3 + $0x88] sm:$0xff]  ;;  %v734_v16 = vld [vmem:[%s6021_s3 + $0xa0] sm:$0xff] }
  0x29   :  { %4944 = vmatpush3.bf16.msra.mxu1 %v4943_v51  ;;  %4945 = vmatprep.subr.bf16.mxu0 %v5137_v3  ;;  %v4967_v13 = vpack.c.bf16 %v729_v10, %v728_v9  ;;  %v735_v17 = vld [vmem:[%s6021_s3 + $0xa8] sm:$0xff]  ;;  %v4970_v19 = vpack.c.bf16 %v731_v15, %v730_v14  ;;  %v732_v22 = vld [vmem:[%s6021_s3 + $0x90] sm:$0xff]  ;;  %v733_v23 = vld [vmem:[%s6021_s3 + $0x98] sm:$0xff]  ;;  %p5121_p4 = pnand %p5120_p3, %p5114_p0 }
  0x2a   :  { %4951 = vmatprep.subr.bf16.mxu1 %v5137_v3  ;;  %v4976_v21 = vpack.c.bf16 %v735_v17, %v734_v16  ;;  %v736_v24 = vld [vmem:[%s6021_s3 + $0xb0] sm:$0xff]  ;;  %v737_v25 = vld [vmem:[%s6021_s3 + $0xb8] sm:$0xff]  ;;  %v4973_v26 = vpack.c.bf16 %v733_v23, %v732_v22  ;;  %v738_v28 = vld [vmem:[%s6021_s3 + $0xc0] sm:$0xff] }
  0x2b   :  { %4558 = vmatmul.mubr.msk.f32.vlgmr.msra.gmra.mrb[6].mxu0 %vm147_vm1, %v5280_v18  ;;  %v4979_v27 = vpack.c.bf16 %v737_v25, %v736_v24  ;;  %v739_v29 = vld [vmem:[%s6021_s3 + $0xc8] sm:$0xff]  ;;  %v742_v30 = vld [vmem:[%s6021_s3 + $0xe0] sm:$0xff]  ;;  %v740_v34 = vld [vmem:[%s6021_s3 + $0xd0] sm:$0xff] }
  0x2c   :  { %4569 = vmatmul.mubr.msk.f32.vlgmr.msra.gmra.mrb[6].mxu1 %vm147_vm1, %v5286_v20  ;;  %4947 = vmatpush3.bf16.msra.mxu0 %v4946_v56  ;;  %v743_v31 = vld [vmem:[%s6021_s3 + $0xe8] sm:$0xff]  ;;  %v4982_v32 = vpack.c.bf16 %v739_v29, %v738_v28  ;;  %v741_v35 = vld [vmem:[%s6021_s3 + $0xd8] sm:$0xff]  ;;  %v744_v36 = vld [vmem:[%s6021_s3 + $0xf0] sm:$0xff] }
  0x2d   :  { %4953 = vmatpush3.bf16.msra.mxu1 %v4952_v57  ;;  %4948 = vmatprep.subr.bf16.mxu0 %v5137_v3  ;;  %v4988_v33 = vpack.c.bf16 %v743_v31, %v742_v30  ;;  %v745_v37 = vld [vmem:[%s6021_s3 + $0xf8] sm:$0xff]  ;;  %v4985_v38 = vpack.c.bf16 %v741_v35, %v740_v34  ;;  %v1362_v40 = vld [vmem:[%s6023_s5] sm:$0xff]  ;;  %v1363_v41 = vld [vmem:[%s6023_s5 + $0x8] sm:$0xff] }
  0x2e   :  { %4954 = vmatprep.subr.bf16.mxu1 %v5137_v3  ;;  %4579 = vmatprep.mubr.msk.f32.mxu0 %vm5138_vm0, %v5139_v11  ;;  %v4991_v39 = vpack.c.bf16 %v745_v37, %v744_v36  ;;  %v4994_v42 = vpack.c.bf16 %v1363_v41, %v1362_v40  ;;  %v1364_v43 = vld [vmem:[%s6023_s5 + $0x10] sm:$0xff]  ;;  %v1365_v44 = vld [vmem:[%s6023_s5 + $0x18] sm:$0xff]  ;;  %v1366_v46 = vld [vmem:[%s6023_s5 + $0x20] sm:$0xff] }
  0x2f   :  { %4590 = vmatprep.mubr.msk.f32.mxu1 %vm5138_vm0, %v5139_v11  ;;  %v4997_v45 = vpack.c.bf16 %v1365_v44, %v1364_v43  ;;  %v1367_v47 = vld [vmem:[%s6023_s5 + $0x28] sm:$0xff]  ;;  %v1370_v48 = vld [vmem:[%s6023_s5 + $0x40] sm:$0xff]  ;;  %v1368_v52 = vld [vmem:[%s6023_s5 + $0x30] sm:$0xff] }
  0x30   :  { %4950 = vmatpush3.bf16.msra.mxu0 %v4949_v62  ;;  %v5000_v49 = vpack.c.bf16 %v1367_v47, %v1366_v46  ;;  %v1371_v50 = vld [vmem:[%s6023_s5 + $0x48] sm:$0xff]  ;;  %v1369_v53 = vld [vmem:[%s6023_s5 + $0x38] sm:$0xff]  ;;  %v1372_v54 = vld [vmem:[%s6023_s5 + $0x50] sm:$0xff] }
  0x31   :  { %4956 = vmatpush3.bf16.msra.mxu1 %v4955_v63  ;;  %4957 = vmatprep.subr.bf16.mxu0 %v5137_v3  ;;  %v5006_v51 = vpack.c.bf16 %v1371_v50, %v1370_v48  ;;  %v5003_v55 = vpack.c.bf16 %v1369_v53, %v1368_v52  ;;  %v1373_v56 = vld [vmem:[%s6023_s5 + $0x58] sm:$0xff]  ;;  %v1374_v58 = vld [vmem:[%s6023_s5 + $0x60] sm:$0xff]  ;;  %v1375_v59 = vld [vmem:[%s6023_s5 + $0x68] sm:$0xff] }
  0x32   :  { %4963 = vmatprep.subr.bf16.mxu1 %v5137_v3  ;;  %v5009_v57 = vpack.c.bf16 %v1373_v56, %v1372_v54  ;;  %v1378_v60 = vld [vmem:[%s6023_s5 + $0x80] sm:$0xff]  ;;  %v5012_v61 = vpack.c.bf16 %v1375_v59, %v1374_v58  ;;  %v1379_v62 = vld [vmem:[%s6023_s5 + $0x88] sm:$0xff]  ;;  %v1376_v0 = vld [vmem:[%s6023_s5 + $0x70] sm:$0xff] }
  0x33   :  { %4580 = vmatmul.mubr.msk.f32.vlgmr.msra.gmra.mrb[8].mxu0 %vm147_vm1, %v5280_v18  ;;  %v5018_v63 = vpack.c.bf16 %v1379_v62, %v1378_v60  ;;  %v1377_v1 = vld [vmem:[%s6023_s5 + $0x78] sm:$0xff]  ;;  %v1380_v2 = vld [vmem:[%s6023_s5 + $0x90] sm:$0xff]  ;;  %v1382_v7 = vld [vmem:[%s6023_s5 + $0xa0] sm:$0xff] }
  0x34   :  { %4591 = vmatmul.mubr.msk.f32.vlgmr.msra.gmra.mrb[8].mxu1 %vm147_vm1, %v5286_v20  ;;  %4959 = vmatpush3.bf16.msra.mxu0 %v4958_v5  ;;  %v5015_v4 = vpack.c.bf16 %v1377_v1, %v1376_v0  ;;  %v1381_v5 = vld [vmem:[%s6023_s5 + $0x98] sm:$0xff]  ;;  %v1383_v8 = vld [vmem:[%s6023_s5 + $0xa8] sm:$0xff]  ;;  %v1386_v9 = vld [vmem:[%s6023_s5 + $0xc0] sm:$0xff] }
  0x35   :  { %4965 = vmatpush3.bf16.msra.mxu1 %v4964_v6  ;;  %4960 = vmatprep.subr.bf16.mxu0 %v5137_v3  ;;  %v5021_v6 = vpack.c.bf16 %v1381_v5, %v1380_v2  ;;  %v5024_v10 = vpack.c.bf16 %v1383_v8, %v1382_v7  ;;  %v1384_v14 = vld [vmem:[%s6023_s5 + $0xb0] sm:$0xff]  ;;  %v1385_v15 = vld [vmem:[%s6023_s5 + $0xb8] sm:$0xff]  ;;  %v1390_v22 = vld [vmem:[%s6023_s5 + $0xe0] sm:$0xff] }
  0x36   :  { %4966 = vmatprep.subr.bf16.mxu1 %v5137_v3  ;;  %4601 = vmatprep.mubr.msk.f32.mxu0 %vm5138_vm0, %v5139_v11  ;;  %v1388_v16 = vld [vmem:[%s6023_s5 + $0xd0] sm:$0xff]  ;;  %v5027_v17 = vpack.c.bf16 %v1385_v15, %v1384_v14  ;;  %v1391_v23 = vld [vmem:[%s6023_s5 + $0xe8] sm:$0xff]  ;;  %v4224_v41 = vld [vmem:[%s6022_s4] ss:$0 sm:$0xff] }
  0x37   :  { %4612 = vmatprep.mubr.msk.f32.mxu1 %vm5138_vm0, %v5139_v11  ;;  %v5036_v24 = vpack.c.bf16 %v1391_v23, %v1390_v22  ;;  %v1392_v25 = vld [vmem:[%s6023_s5 + $0xf0] sm:$0xff]  ;;  %v4208_v43 = vld [vmem:[%s6020_s2] ss:$0 sm:$0xff]  ;;  %v4225_v47 = vld [vmem:[%s6022_s4 + $0x1] ss:$0 sm:$0xff] }
  0x38   :  { %4962 = vmatpush3.bf16.msra.mxu0 %v4961_v12  ;;  %v1387_v12 = vld [vmem:[%s6023_s5 + $0xc8] sm:$0xff]  ;;  %v4209_v50 = vld [vmem:[%s6020_s2 + $0x1] ss:$0 sm:$0xff]  ;;  %v4226_v52 = vld [vmem:[%s6022_s4 + $0x2] ss:$0 sm:$0xff] }
  0x39   :  { %4968 = vmatpush3.bf16.msra.mxu1 %v4967_v13  ;;  %4969 = vmatprep.subr.bf16.mxu0 %v5137_v3  ;;  %v5030_v13 = vpack.c.bf16 %v1387_v12, %v1386_v9  ;;  %v4227_v53 = vld [vmem:[%s6022_s4 + $0x3] ss:$0 sm:$0xff]  ;;  %v4210_v56 = vld [vmem:[%s6020_s2 + $0x2] ss:$0 sm:$0xff]  ;;  %v4228_v1 = vld [vmem:[%s6022_s4 + $0x4] ss:$0 sm:$0xff] }
  0x3a   :  { %4975 = vmatprep.subr.bf16.mxu1 %v5137_v3  ;;  %v4211_v60 = vld [vmem:[%s6020_s2 + $0x3] ss:$0 sm:$0xff]  ;;  %v4229_v2 = vld [vmem:[%s6022_s4 + $0x5] ss:$0 sm:$0xff]  ;;  %v4212_v5 = vld [vmem:[%s6020_s2 + $0x4] ss:$0 sm:$0xff] }
  0x3b   :  { %4602 = vmatmul.mubr.msk.f32.vlgmr.msra.gmra.mrb[10].mxu0 %vm147_vm1, %v5280_v18  ;;  %v4213_v9 = vld [vmem:[%s6020_s2 + $0x5] ss:$0 sm:$0xff]  ;;  %v4230_v15 = vld [vmem:[%s6022_s4 + $0x6] ss:$0 sm:$0xff] }
  0x3c   :  { %4613 = vmatmul.mubr.msk.f32.vlgmr.msra.gmra.mrb[10].mxu1 %vm147_vm1, %v5286_v20  ;;  %4971 = vmatpush3.bf16.msra.mxu0 %v4970_v19  ;;  %v1389_v19 = vld [vmem:[%s6023_s5 + $0xd8] sm:$0xff] }
  0x3d   :  { %4977 = vmatpush3.bf16.msra.mxu1 %v4976_v21  ;;  %4972 = vmatprep.subr.bf16.mxu0 %v5137_v3  ;;  %v5033_v21 = vpack.c.bf16 %v1389_v19, %v1388_v16  ;;  %v4231_v16 = vld [vmem:[%s6022_s4 + $0x7] ss:$0 sm:$0xff]  ;;  %v4214_v19 = vld [vmem:[%s6020_s2 + $0x6] ss:$0 sm:$0xff] }
  0x3e   :  { %4978 = vmatprep.subr.bf16.mxu1 %v5137_v3  ;;  %4623 = vmatprep.mubr.msk.f32.mxu0 %vm5138_vm0, %v5139_v11 }
  0x3f   :  { %4634 = vmatprep.mubr.msk.f32.mxu1 %vm5138_vm0, %v5139_v11 }
  0x40   :  { %4974 = vmatpush3.bf16.msra.mxu0 %v4973_v26  ;;  %v1393_v26 = vld [vmem:[%s6023_s5 + $0xf8] sm:$0xff] }
  0x41   :  { %4980 = vmatpush3.bf16.msra.mxu1 %v4979_v27  ;;  %4981 = vmatprep.subr.bf16.mxu0 %v5137_v3  ;;  %v5039_v27 = vpack.c.bf16 %v1393_v26, %v1392_v25 }
  0x42   :  { %4987 = vmatprep.subr.bf16.mxu1 %v5137_v3 }
  0x43   :  { %4624 = vmatmul.mubr.msk.f32.vlgmr.msra.gmra.mrb[12].mxu0 %vm147_vm1, %v5280_v18 }
  0x44   :  { %4635 = vmatmul.mubr.msk.f32.vlgmr.msra.gmra.mrb[12].mxu1 %vm147_vm1, %v5286_v20  ;;  %4983 = vmatpush3.bf16.msra.mxu0 %v4982_v32 }
  0x45   :  { %4989 = vmatpush3.bf16.msra.mxu1 %v4988_v33  ;;  %4984 = vmatprep.subr.bf16.mxu0 %v5137_v3 }
  0x46   :  { %4990 = vmatprep.subr.bf16.mxu1 %v5137_v3  ;;  %4645 = vmatprep.mubr.msk.f32.mxu0 %vm5138_vm0, %v5139_v11 }
  0x47   :  { %4656 = vmatprep.mubr.msk.f32.mxu1 %vm5138_vm0, %v5139_v11 }
  0x48   :  { %4986 = vmatpush3.bf16.msra.mxu0 %v4985_v38 }
  0x49   :  { %4992 = vmatpush3.bf16.msra.mxu1 %v4991_v39  ;;  %4993 = vmatprep.subr.bf16.mxu0 %v5137_v3 }
  0x4a   :  { %4999 = vmatprep.subr.bf16.mxu1 %v5137_v3 }
  0x4b   :  { %4646 = vmatmul.mubr.msk.f32.vlgmr.msra.gmra.mrb[14].mxu0 %vm147_vm1, %v5280_v18 }
  0x4c   :  { %4657 = vmatmul.mubr.msk.f32.vlgmr.msra.gmra.mrb[14].mxu1 %vm147_vm1, %v5286_v20  ;;  %4995 = vmatpush3.bf16.msra.mxu0 %v4994_v42 }
  0x4d   :  { %4996 = vmatprep.subr.bf16.mxu0 %v5137_v3  ;;  %4667 = vmatprep.mubr.msk.f32.mxu0 %vm5138_vm0, %v5139_v11 }
  0x4e   :  { %4678 = vmatprep.mubr.msk.f32.mxu1 %vm5138_vm0, %v5139_v11  ;;  %5001 = vmatpush3.bf16.msra.mxu1 %v5000_v49 }
  0x4f   :  { %5002 = vmatprep.subr.bf16.mxu1 %v5137_v3 }
  0x50   :  { %4998 = vmatpush3.bf16.msra.mxu0 %v4997_v45 }
  0x51   :  { %5005 = vmatprep.subr.bf16.mxu0 %v5137_v3 }
  0x52   :  { %5004 = vmatpush3.bf16.msra.mxu1 %v5003_v55 }
  0x53   :  { %4668 = vmatmul.mubr.msk.f32.vlgmr.msra.gmra.mrb[16].mxu0 %vm147_vm1, %v5280_v18  ;;  %5011 = vmatprep.subr.bf16.mxu1 %v5137_v3 }
  0x54   :  { %5007 = vmatpush3.bf16.msra.mxu0 %v5006_v51  ;;  %4689 = vmatprep.mubr.msk.f32.mxu0 %vm5138_vm0, %v5139_v11 }
  0x55   :  { %5008 = vmatprep.subr.bf16.mxu0 %v5137_v3  ;;  %4679 = vmatmul.mubr.msk.f32.vlgmr.msra.gmra.mrb[16].mxu1 %vm147_vm1, %v5286_v20 }
  0x56   :  { %5013 = vmatpush3.bf16.msra.mxu1 %v5012_v61  ;;  %4700 = vmatprep.mubr.msk.f32.mxu1 %vm5138_vm0, %v5139_v11 }
  0x57   :  { %5014 = vmatprep.subr.bf16.mxu1 %v5137_v3 }
  0x58   :  { %5010 = vmatpush3.bf16.msra.mxu0 %v5009_v57 }
  0x59   :  { %5017 = vmatprep.subr.bf16.mxu0 %v5137_v3 }
  0x5a   :  { %5016 = vmatpush3.bf16.msra.mxu1 %v5015_v4 }
  0x5b   :  { %4690 = vmatmul.mubr.msk.f32.vlgmr.msra.gmra.mrb[18].mxu0 %vm147_vm1, %v5280_v18  ;;  %5023 = vmatprep.subr.bf16.mxu1 %v5137_v3 }
  0x5c   :  { %5019 = vmatpush3.bf16.msra.mxu0 %v5018_v63  ;;  %4711 = vmatprep.mubr.msk.f32.mxu0 %vm5138_vm0, %v5139_v11 }
  0x5d   :  { %5020 = vmatprep.subr.bf16.mxu0 %v5137_v3  ;;  %4701 = vmatmul.mubr.msk.f32.vlgmr.msra.gmra.mrb[18].mxu1 %vm147_vm1, %v5286_v20 }
  0x5e   :  { %5025 = vmatpush3.bf16.msra.mxu1 %v5024_v10  ;;  %4722 = vmatprep.mubr.msk.f32.mxu1 %vm5138_vm0, %v5139_v11 }
  0x5f   :  { %5026 = vmatprep.subr.bf16.mxu1 %v5137_v3 }
  0x60   :  { %5022 = vmatpush3.bf16.msra.mxu0 %v5021_v6 }
  0x61   :  { %5029 = vmatprep.subr.bf16.mxu0 %v5137_v3 }
  0x62   :  { %5028 = vmatpush3.bf16.msra.mxu1 %v5027_v17 }
  0x63   :  { %4712 = vmatmul.mubr.msk.f32.vlgmr.msra.gmra.mrb[20].mxu0 %vm147_vm1, %v5280_v18  ;;  %5035 = vmatprep.subr.bf16.mxu1 %v5137_v3 }
  0x64   :  { %5031 = vmatpush3.bf16.msra.mxu0 %v5030_v13  ;;  %4733 = vmatprep.mubr.msk.f32.mxu0 %vm5138_vm0, %v5139_v11 }
  0x65   :  { %5032 = vmatprep.subr.bf16.mxu0 %v5137_v3  ;;  %4723 = vmatmul.mubr.msk.f32.vlgmr.msra.gmra.mrb[20].mxu1 %vm147_vm1, %v5286_v20 }
  0x66   :  { %5037 = vmatpush3.bf16.msra.mxu1 %v5036_v24  ;;  %4744 = vmatprep.mubr.msk.f32.mxu1 %vm5138_vm0, %v5139_v11  ;;  %v4215_v24 = vld [vmem:[%s6020_s2 + $0x7] ss:$0 sm:$0xff] }
  0x67   :  { %5038 = vmatprep.subr.bf16.mxu1 %v5137_v3 }
  0x68   :  { %5034 = vmatpush3.bf16.msra.mxu0 %v5033_v21 }
  0x69   :  { %4747 = vmatprep.subr.mxu0 %v5139_v11 }
  0x6a   :  { %5040 = vmatpush3.bf16.msra.mxu1 %v5039_v27 }
  0x6b   :  { %4734 = vmatmul.mubr.msk.f32.vlgmr.msra.gmra.mrb[22].mxu0 %vm147_vm1, %v5280_v18  ;;  %4762 = vmatprep.subr.mxu1 %v5139_v11 }
  0x6c   :  { %4749 = vmatprep.mubr.msk.f32.mxu0 %vm5138_vm0, %v5139_v11 }
  0x6d   :  { %4745 = vmatmul.mubr.msk.f32.vlgmr.msra.gmra.mrb[22].mxu1 %vm147_vm1, %v5286_v20 }
  0x6e   :  { %4764 = vmatprep.mubr.msk.f32.mxu1 %vm5138_vm0, %v5139_v11 }
  0xe6   :  { %v217_v3 = vpop.f32.mrb[0].mxu0 }
  0xe7   :  { %v4493_v18 = vpop.f32.mrb[1].mxu0  ;;  %v290_v28 = vpop.f32.mrb[0].mxu1  ;;  %v218_v49 = vadd.f32 %v4208_v43, %v217_v3 }
  0xe8   :  { %v4504_v29 = vpop.f32.mrb[1].mxu1  ;;  %v291_v54 = vadd.f32 %v4209_v50, %v290_v28  ;;  %v4240_v18 = vld [vmem:[%s6024_s6] ss:$0 sm:$0xff] }
  0xee   :  { %v360_v30 = vpop.f32.mrb[2].mxu0 }
  0xef   :  { %v4515_v31 = vpop.f32.mrb[3].mxu0  ;;  %v430_v32 = vpop.f32.mrb[2].mxu1  ;;  %v361_v63 = vadd.f32 %v4210_v56, %v360_v30 }
  0xf0   :  { %v4526_v33 = vpop.f32.mrb[3].mxu1  ;;  %v431_v0 = vadd.f32 %v4211_v60, %v430_v32  ;;  %v4241_v31 = vld [vmem:[%s6024_s6 + $0x1] ss:$0 sm:$0xff] }
  0xf6   :  { %v500_v34 = vpop.f32.mrb[4].mxu0 }
  0xf7   :  { %v4537_v35 = vpop.f32.mrb[5].mxu0  ;;  %v570_v36 = vpop.f32.mrb[4].mxu1  ;;  %v501_v13 = vadd.f32 %v4212_v5, %v500_v34 }
  0xf8   :  { %v4548_v37 = vpop.f32.mrb[5].mxu1  ;;  %v571_v14 = vadd.f32 %v4213_v9, %v570_v36 }
  0xfe   :  { %v5681_v38 = vpop.f32.mrb[6].mxu0 }
  0xff   :  { %v4559_v39 = vpop.f32.mrb[7].mxu0  ;;  %v5683_v40 = vpop.f32.mrb[6].mxu1  ;;  %v641_v27 = vadd.f32 %v4214_v19, %v5681_v38 }
 0x100   :  { %v4570_v20 = vpop.f32.mrb[7].mxu1  ;;  %v711_v3 = vadd.f32 %v4215_v24, %v5683_v40 }
 0x106   :  { %v868_v42 = vpop.f32.mrb[8].mxu0 }
 0x107   :  { %v869_v44 = vadd.f32 %v4224_v41, %v868_v42  ;;  %v4581_v45 = vpop.f32.mrb[9].mxu0  ;;  %v938_v46 = vpop.f32.mrb[8].mxu1 }
 0x108   :  { %v4592_v48 = vpop.f32.mrb[9].mxu1  ;;  %v939_v51 = vadd.f32 %v4225_v47, %v938_v46 }
 0x109   :  { %4748 = vmatpush3.xpose.msk.msra.mxu0 %vm2010_vm2, %v869_v44 }
 0x10a   :  { %4752 = vmatprep.subr.mxu0 %v5139_v11 }
 0x10c   :  { %4750 = vmatmul.mubr.msk.f32.vlgmr.msra.gmra.mrb[24].mxu0 %vm2010_vm2, %v218_v49 }
 0x10d   :  { %4753 = vmatpush3.xpose.msk.msra.mxu0 %vm2010_vm2, %v939_v51  ;;  %4754 = vmatprep.mubr.msk.f32.mxu0 %vm5138_vm0, %v5139_v11 }
 0x10e   :  { %v1008_v55 = vpop.f32.mrb[10].mxu0  ;;  %4757 = vmatprep.subr.mxu0 %v5139_v11 }
 0x10f   :  { %v1009_v57 = vadd.f32 %v4226_v52, %v1008_v55  ;;  %v1078_v58 = vpop.f32.mrb[10].mxu1  ;;  %v4603_v59 = vpop.f32.mrb[11].mxu0 }
 0x110   :  { %v1079_v61 = vadd.f32 %v4227_v53, %v1078_v58  ;;  %v4614_v62 = vpop.f32.mrb[11].mxu1  ;;  %4755 = vmatmul.mubr.msk.f32.vlgmr.msra.gmra.mrb[26].mxu0 %vm2010_vm2, %v291_v54 }
 0x111   :  { %4758 = vmatpush3.xpose.msk.msra.mxu0 %vm2010_vm2, %v1009_v57  ;;  %4759 = vmatprep.mubr.msk.f32.mxu0 %vm5138_vm0, %v5139_v11 }
 0x112   :  { %4763 = vmatpush3.xpose.msk.msra.mxu1 %vm2010_vm2, %v1079_v61  ;;  %4767 = vmatprep.subr.mxu0 %v5139_v11 }
 0x113   :  { %4772 = vmatprep.subr.mxu1 %v5139_v11 }
 0x114   :  { %4760 = vmatmul.mubr.msk.f32.vlgmr.msra.gmra.mrb[28].mxu0 %vm2010_vm2, %v361_v63 }
 0x115   :  { %4765 = vmatmul.mubr.msk.f32.vlgmr.msra.gmra.mrb[24].mxu1 %vm2010_vm2, %v431_v0  ;;  %4769 = vmatprep.mubr.msk.f32.mxu0 %vm5138_vm0, %v5139_v11 }
 0x116   :  { %v1148_v4 = vpop.f32.mrb[12].mxu0  ;;  %4774 = vmatprep.mubr.msk.f32.mxu1 %vm5138_vm0, %v5139_v11 }
 0x117   :  { %v1149_v6 = vadd.f32 %v4228_v1, %v1148_v4  ;;  %v1218_v7 = vpop.f32.mrb[12].mxu1  ;;  %v4625_v8 = vpop.f32.mrb[13].mxu0 }
 0x118   :  { %v1219_v10 = vadd.f32 %v4229_v2, %v1218_v7  ;;  %v4636_v12 = vpop.f32.mrb[13].mxu1 }
 0x119   :  { %4768 = vmatpush3.xpose.msk.msra.mxu0 %vm2010_vm2, %v1149_v6 }
 0x11a   :  { %4773 = vmatpush3.xpose.msk.msra.mxu1 %vm2010_vm2, %v1219_v10  ;;  %4777 = vmatprep.subr.mxu0 %v5139_v11 }
 0x11b   :  { %4782 = vmatprep.subr.mxu1 %v5139_v11 }
 0x11c   :  { %4770 = vmatmul.mubr.msk.f32.vlgmr.msra.gmra.mrb[30].mxu0 %vm2010_vm2, %v501_v13 }
 0x11d   :  { %4775 = vmatmul.mubr.msk.f32.vlgmr.msra.gmra.mrb[26].mxu1 %vm2010_vm2, %v571_v14  ;;  %4779 = vmatprep.mubr.msk.f32.mxu0 %vm5138_vm0, %v5139_v11 }
 0x11e   :  { %v1288_v17 = vpop.f32.mrb[14].mxu0  ;;  %4784 = vmatprep.mubr.msk.f32.mxu1 %vm5138_vm0, %v5139_v11 }
 0x11f   :  { %v1289_v21 = vadd.f32 %v4230_v15, %v1288_v17  ;;  %v1358_v22 = vpop.f32.mrb[14].mxu1  ;;  %v4647_v23 = vpop.f32.mrb[15].mxu0 }
 0x120   :  { %v1359_v25 = vadd.f32 %v4231_v16, %v1358_v22  ;;  %v4658_v26 = vpop.f32.mrb[15].mxu1 }
 0x121   :  { %4778 = vmatpush3.xpose.msk.msra.mxu0 %vm2010_vm2, %v1289_v21 }
 0x122   :  { %4783 = vmatpush3.xpose.msk.msra.mxu1 %vm2010_vm2, %v1359_v25  ;;  %4787 = vmatprep.subr.mxu0 %v5139_v11 }
 0x123   :  { %4792 = vmatprep.subr.mxu1 %v5139_v11 }
 0x124   :  { %4780 = vmatmul.mubr.msk.f32.vlgmr.msra.gmra.mrb[32].mxu0 %vm2010_vm2, %v641_v27 }
 0x125   :  { %4785 = vmatmul.mubr.msk.f32.vlgmr.msra.gmra.mrb[28].mxu1 %vm2010_vm2, %v711_v3  ;;  %4789 = vmatprep.mubr.msk.f32.mxu0 %vm5138_vm0, %v5139_v11 }
 0x126   :  { %4794 = vmatprep.mubr.msk.f32.mxu1 %vm5138_vm0, %v5139_v11  ;;  %v1516_v28 = vpop.f32.mrb[16].mxu0 }
 0x127   :  { %v1517_v29 = vadd.f32 %v4240_v18, %v1516_v28  ;;  %v4669_v30 = vpop.f32.mrb[17].mxu0 }
 0x128   :  { %v1586_v32 = vpop.f32.mrb[16].mxu1 }
 0x129   :  { %4788 = vmatpush3.msra.mxu0 %v1517_v29  ;;  %v1587_v34 = vadd.f32 %v4241_v31, %v1586_v32  ;;  %v4680_v35 = vpop.f32.mrb[17].mxu1 }
 0x12a   :  { %4797 = vmatprep.subr.mxu0 %v5139_v11 }
 0x12b   :  { %4793 = vmatpush3.msra.mxu1 %v1587_v34 }
 0x12c   :  { %4802 = vmatprep.subr.mxu1 %v5139_v11 }
 0x12e   :  { %v5782_v33 = vpop.f32.mrb[18].mxu0 }
 0x12f   :  { %v4691_v36 = vpop.f32.mrb[19].mxu0 }
 0x130   :  { %v5785_v37 = vpop.f32.mrb[18].mxu1 }
 0x131   :  { %v4702_v39 = vpop.f32.mrb[19].mxu1 }
 0x136   :  { %v5787_v38 = vpop.f32.mrb[20].mxu0 }
 0x137   :  { %v4713_v40 = vpop.f32.mrb[21].mxu0 }
 0x138   :  { %v5789_v20 = vpop.f32.mrb[20].mxu1 }
 0x139   :  { %v4724_v42 = vpop.f32.mrb[21].mxu1 }
 0x13e   :  { %v5791_v41 = vpop.f32.mrb[22].mxu0 }
 0x13f   :  { %v4735_v43 = vpop.f32.mrb[23].mxu0 }
 0x140   :  { %v5793_v44 = vpop.f32.mrb[22].mxu1 }
 0x141   :  { %v4746_v45 = vpop.f32.mrb[23].mxu1 }
 0x1df   :  { %v2083_v46 = vpop.f32.mrb[24].mxu0 }
 0x1e0   :  { %v4751_v47 = vpop.f32.mrb[25].mxu0  ;;  %v2619_v48 = vsel %vm2010_vm2, %v2083_v46, -inf }
 0x1e1   :  { %2620 = vmax.xlane.f32.xlu0 %v2619_v48 }
 0x1e3   :  { %v2159_v49 = vpop.f32.mrb[26].mxu0 }
 0x1e4   :  { %v4756_v50 = vpop.f32.mrb[27].mxu0  ;;  %v2622_v51 = vsel %vm2010_vm2, %v2159_v49, -inf }
 0x1e5   :  { %2623 = vmax.xlane.f32.xlu0 %v2622_v51 }
 0x1e7   :  { %v2235_v52 = vpop.f32.mrb[28].mxu0 }
 0x1e8   :  { %v2311_v53 = vpop.f32.mrb[24].mxu1  ;;  %v4761_v54 = vpop.f32.mrb[29].mxu0  ;;  %v2625_v55 = vsel %vm2010_vm2, %v2235_v52, -inf }
 0x1e9   :  { %v4766_v56 = vpop.f32.mrb[25].mxu1  ;;  %2626 = vmax.xlane.f32.xlu1 %v2625_v55  ;;  %v2628_v57 = vsel %vm2010_vm2, %v2311_v53, -inf }
 0x1ea   :  { %v4242_v56 = vld [vmem:[%s6024_s6 + $0x2] ss:$0 sm:$0xff] }
 0x1ed   :  { %2629 = vmax.xlane.f32.xlu1 %v2628_v57 }
 0x1ef   :  { %v2387_v58 = vpop.f32.mrb[30].mxu0 }
 0x1f0   :  { %v2463_v59 = vpop.f32.mrb[26].mxu1  ;;  %v4771_v60 = vpop.f32.mrb[31].mxu0  ;;  %v2631_v61 = vsel %vm2010_vm2, %v2387_v58, -inf }
 0x1f1   :  { %v4776_v62 = vpop.f32.mrb[27].mxu1  ;;  %v2634_v63 = vsel %vm2010_vm2, %v2463_v59, -inf  ;;  %2632 = vmax.xlane.f32.xlu0 %v2631_v61  ;;  %v1657_v60 = vadd.f32 %v4242_v56, %v5782_v33  ;;  %v4243_v61 = vld [vmem:[%s6024_s6 + $0x3] ss:$0 sm:$0xff]  ;;  %v4244_v33 = vld [vmem:[%s6024_s6 + $0x4] ss:$0 sm:$0xff] }
 0x1f2   :  { %2635 = vmax.xlane.f32.xlu1 %v2634_v63 }
 0x1f7   :  { %v2539_v0 = vpop.f32.mrb[32].mxu0 }
 0x1f8   :  { %v2615_v1 = vpop.f32.mrb[28].mxu1  ;;  %v4781_v2 = vpop.f32.mrb[33].mxu0  ;;  %v2637_v4 = vsel %vm2010_vm2, %v2539_v0, -inf }
 0x1f9   :  { %v4786_v5 = vpop.f32.mrb[29].mxu1  ;;  %v2640_v6 = vsel %vm2010_vm2, %v2615_v1, -inf  ;;  %2638 = vmax.xlane.f32.xlu0 %v2637_v4 }
 0x1fa   :  { %2641 = vmax.xlane.f32.xlu1 %v2640_v6  ;;  %v1797_v6 = vadd.f32 %v4244_v33, %v5787_v38  ;;  %v4246_v38 = vld [vmem:[%s6024_s6 + $0x6] ss:$0 sm:$0xff] }
 0x26e   :  { %v2621_v7 = vpop.xlane.xlu0 %2620 }
 0x26f   :  { %v2643_v8 = vsub.f32 %v2083_v46, %v2621_v7 }
 0x271   :  { %v2651_v9 = vmul.f32 1.442695, %v2643_v8 }
 0x272   :  { %v2624_v10 = vpop.xlane.xlu0 %2623 }
 0x273   :  { %5071 = vpow2.f32 %v2651_v9  ;;  %v2644_v12 = vsub.f32 %v2159_v49, %v2624_v10 }
 0x275   :  { %v2653_v13 = vmul.f32 1.442695, %v2644_v12 }
 0x276   :  { %v2627_v14 = vpop.xlane.xlu1 %2626 }
 0x277   :  { %5073 = vpow2.f32 %v2653_v13  ;;  %v2645_v15 = vsub.f32 %v2235_v52, %v2627_v14  ;;  %v4247_v14 = vld [vmem:[%s6024_s6 + $0x7] ss:$0 sm:$0xff] }
 0x279   :  { %v2655_v16 = vmul.f32 1.442695, %v2645_v15 }
 0x27a   :  { %v2630_v17 = vpop.xlane.xlu1 %2629 }
 0x27b   :  { %5075 = vpow2.f32 %v2655_v16  ;;  %v2646_v19 = vsub.f32 %v2311_v53, %v2630_v17  ;;  %v1937_v16 = vadd.f32 %v4246_v38, %v5791_v41 }
 0x27d   :  { %v5072_v21 = vpop.eup %5071  ;;  %v2657_v22 = vmul.f32 1.442695, %v2646_v19  ;;  %v2007_v19 = vadd.f32 %v4247_v14, %v5793_v44 }
 0x27e   :  { %v2633_v23 = vpop.xlane.xlu0 %2632  ;;  %v2667_v24 = vsel %vm2010_vm2, %v5072_v21, 0.0 }
 0x27f   :  { %5077 = vpow2.f32 %v2657_v22  ;;  %v2636_v25 = vpop.xlane.xlu1 %2635  ;;  %v2647_v26 = vsub.f32 %v2387_v58, %v2633_v23  ;;  %2668 = vadd.xlane.f32.xlu0 %v2667_v24  ;;  %v3291_v23 = vld [vmem:[%s6025_s7] sm:$0xff]  ;;  %v3292_v24 = vld [vmem:[%s6025_s7 + $0x8] sm:$0xff] }
 0x280   :  { %v2648_v27 = vsub.f32 %v2463_v59, %v2636_v25  ;;  %v3293_v25 = vld [vmem:[%s6025_s7 + $0x10] sm:$0xff] }
 0x281   :  { %v5074_v3 = vpop.eup %5073  ;;  %v2659_v18 = vmul.f32 1.442695, %v2647_v26 }
 0x282   :  { %v2661_v28 = vmul.f32 1.442695, %v2648_v27  ;;  %v2670_v29 = vsel %vm2010_vm2, %v5074_v3, 0.0 }
 0x283   :  { %5079 = vpow2.f32 %v2659_v18  ;;  %2671 = vadd.xlane.f32.xlu1 %v2670_v29  ;;  %v3295_v29 = vld [vmem:[%s6025_s7 + $0x20] sm:$0xff] }
 0x284   :  { %5081 = vpow2.f32 %v2661_v28 }
 0x285   :  { %v5076_v30 = vpop.eup %5075 }
 0x286   :  { %v2639_v31 = vpop.xlane.xlu0 %2638  ;;  %v2673_v32 = vsel %vm2010_vm2, %v5076_v30, 0.0 }
 0x287   :  { %v2642_v34 = vpop.xlane.xlu1 %2641  ;;  %v2649_v35 = vsub.f32 %v2539_v0, %v2639_v31  ;;  %2674 = vadd.xlane.f32.xlu0 %v2673_v32  ;;  %v3296_v32 = vld [vmem:[%s6025_s7 + $0x28] sm:$0xff] }
 0x288   :  { %v2650_v36 = vsub.f32 %v2615_v1, %v2642_v34  ;;  %v1727_v1 = vadd.f32 %v4243_v61, %v5785_v37  ;;  %v4245_v37 = vld [vmem:[%s6024_s6 + $0x5] ss:$0 sm:$0xff] }
 0x289   :  { %v5078_v39 = vpop.eup %5077  ;;  %v2663_v40 = vmul.f32 1.442695, %v2649_v35  ;;  %v1867_v10 = vadd.f32 %v4245_v37, %v5789_v20 }
 0x28a   :  { %v2665_v42 = vmul.f32 1.442695, %v2650_v36  ;;  %v2676_v43 = vsel %vm2010_vm2, %v5078_v39, 0.0  ;;  %v3297_v36 = vld [vmem:[%s6025_s7 + $0x30] sm:$0xff] }
 0x28b   :  { %5083 = vpow2.f32 %v2663_v40  ;;  %2677 = vadd.xlane.f32.xlu1 %v2676_v43  ;;  %v3298_v40 = vld [vmem:[%s6025_s7 + $0x38] sm:$0xff] }
 0x28c   :  { %5085 = vpow2.f32 %v2665_v42 }
 0x28d   :  { %v5807_v45 = vpop.eup %5079 }
 0x28e   :  { %v5809_v46 = vpop.eup %5081  ;;  %v2679_v47 = vsel %vm2010_vm2, %v5807_v45, 0.0 }
 0x28f   :  { %v2682_v48 = vsel %vm2010_vm2, %v5809_v46, 0.0  ;;  %2680 = vadd.xlane.f32.xlu0 %v2679_v47 }
 0x290   :  { %2683 = vadd.xlane.f32.xlu1 %v2682_v48 }
 0x295   :  { %v5815_v49 = vpop.eup %5083 }
 0x296   :  { %v5817_v50 = vpop.eup %5085  ;;  %v2685_v51 = vsel %vm2010_vm2, %v5815_v49, 0.0 }
 0x297   :  { %v2688_v52 = vsel %vm2010_vm2, %v5817_v50, 0.0  ;;  %2686 = vadd.xlane.f32.xlu0 %v2685_v51 }
 0x298   :  { %2689 = vadd.xlane.f32.xlu1 %v2688_v52 }
 0x30c   :  { %v2669_v53 = vpop.xlane.xlu0 %2668 }
 0x30d   :  { %5087 = vrcp.f32 %v2669_v53 }
 0x310   :  { %v2672_v54 = vpop.xlane.xlu1 %2671 }
 0x311   :  { %5089 = vrcp.f32 %v2672_v54 }
 0x314   :  { %v2675_v55 = vpop.xlane.xlu0 %2674 }
 0x315   :  { %5091 = vrcp.f32 %v2675_v55 }
 0x317   :  { %v5088_v57 = vpop.eup %5087 }
 0x318   :  { %v2699_v58 = vmul.f32 %v5088_v57, %v5072_v21  ;;  %v2678_v59 = vpop.xlane.xlu1 %2677 }
 0x319   :  { %5093 = vrcp.f32 %v2678_v59 }
 0x31a   :  { %4790 = vmatmul.mubr.msk.f32.vlgmr.msra.gmra.mrb[34].mxu0 %vm2010_vm2, %v2699_v58 }
 0x31b   :  { %v5090_v62 = vpop.eup %5089  ;;  %4798 = vmatpush3.msra.mxu0 %v1657_v60  ;;  %4799 = vmatprep.mubr.msk.f32.mxu0 %vm5138_vm0, %v5139_v11 }
 0x31c   :  { %v2700_v63 = vmul.f32 %v5090_v62, %v5074_v3  ;;  %v2681_v0 = vpop.xlane.xlu0 %2680  ;;  %4807 = vmatprep.subr.mxu0 %v5139_v11  ;;  %v3294_v3 = vld [vmem:[%s6025_s7 + $0x18] sm:$0xff] }
 0x31d   :  { %v2684_v2 = vpop.xlane.xlu1 %2683  ;;  %5095 = vrcp.f32 %v2681_v0 }
 0x31e   :  { %5097 = vrcp.f32 %v2684_v2  ;;  %4795 = vmatmul.mubr.msk.f32.vlgmr.msra.gmra.mrb[30].mxu1 %vm2010_vm2, %v2700_v63  ;;  %v4288_v2 = vld [vmem:[%s6026_s8] ss:$0 sm:$0xff] }
 0x31f   :  { %v5092_v4 = vpop.eup %5091  ;;  %4803 = vmatpush3.msra.mxu1 %v1727_v1  ;;  %4804 = vmatprep.mubr.msk.f32.mxu1 %vm5138_vm0, %v5139_v11 }
 0x320   :  { %v2701_v5 = vmul.f32 %v5092_v4, %v5076_v30  ;;  %4812 = vmatprep.subr.mxu1 %v5139_v11 }
 0x322   :  { %4800 = vmatmul.mubr.msk.f32.vlgmr.msra.gmra.mrb[36].mxu0 %vm2010_vm2, %v2701_v5 }
 0x323   :  { %v5094_v7 = vpop.eup %5093  ;;  %4808 = vmatpush3.msra.mxu0 %v1797_v6  ;;  %4809 = vmatprep.mubr.msk.f32.mxu0 %vm5138_vm0, %v5139_v11 }
 0x324   :  { %v2702_v8 = vmul.f32 %v5094_v7, %v5078_v39  ;;  %v2687_v9 = vpop.xlane.xlu0 %2686  ;;  %4817 = vmatprep.subr.mxu0 %v5139_v11 }
 0x325   :  { %v2690_v12 = vpop.xlane.xlu1 %2689  ;;  %5099 = vrcp.f32 %v2687_v9  ;;  %v5111_v9 = vld [vmem:[%s6041_s22] sm:$0xff] }
 0x326   :  { %5101 = vrcp.f32 %v2690_v12  ;;  %4805 = vmatmul.mubr.msk.f32.vlgmr.msra.gmra.mrb[32].mxu1 %vm2010_vm2, %v2702_v8  ;;  %v5112_v12 = vld [vmem:[%s6041_s22 + $0x8] sm:$0xff] }
 0x327   :  { %v5096_v13 = vpop.eup %5095  ;;  %4813 = vmatpush3.msra.mxu1 %v1867_v10  ;;  %4814 = vmatprep.mubr.msk.f32.mxu1 %vm5138_vm0, %v5139_v11 }
 0x328   :  { %v5098_v15 = vpop.eup %5097  ;;  %v2703_v20 = vmul.f32 %v5096_v13, %v5807_v45  ;;  %4822 = vmatprep.subr.mxu1 %v5139_v11 }
 0x329   :  { %v2704_v17 = vmul.f32 %v5098_v15, %v5809_v46 }
 0x32a   :  { %4810 = vmatmul.mubr.msk.f32.vlgmr.msra.gmra.mrb[38].mxu0 %vm2010_vm2, %v2703_v20 }
 0x32b   :  { %4815 = vmatmul.mubr.msk.f32.vlgmr.msra.gmra.mrb[34].mxu1 %vm2010_vm2, %v2704_v17  ;;  %4818 = vmatpush3.msra.mxu0 %v1937_v16 }
 0x32c   :  { %4823 = vmatpush3.msra.mxu1 %v2007_v19  ;;  %4819 = vmatprep.mubr.msk.f32.mxu0 %vm5138_vm0, %v5139_v11  ;;  %v3949_v19 = vld [vmem:[%s6027_s9] sm:$0xff] }
 0x32d   :  { %4824 = vmatprep.mubr.msk.f32.mxu1 %vm5138_vm0, %v5139_v11  ;;  %4827 = vmatprep.subr.mxu0 %v5139_v11 }
 0x32e   :  { %4832 = vmatprep.subr.mxu1 %v5139_v11 }
 0x32f   :  { %v5100_v41 = vpop.eup %5099 }
 0x330   :  { %v5102_v21 = vpop.eup %5101  ;;  %v2705_v44 = vmul.f32 %v5100_v41, %v5815_v49  ;;  %v3950_v41 = vld [vmem:[%s6027_s9 + $0x8] sm:$0xff] }
 0x331   :  { %v2706_v22 = vmul.f32 %v5102_v21, %v5817_v50  ;;  %v3951_v21 = vld [vmem:[%s6027_s9 + $0x10] sm:$0xff] }
 0x332   :  { %4820 = vmatmul.mubr.msk.f32.vlgmr.msra.gmra.mrb[40].mxu0 %vm2010_vm2, %v2705_v44  ;;  %v5041_v44 = vpack.c.bf16 %v3950_v41, %v3949_v19 }
 0x333   :  { %4825 = vmatmul.mubr.msk.f32.vlgmr.msra.gmra.mrb[36].mxu1 %vm2010_vm2, %v2706_v22  ;;  %4829 = vmatprep.mubr.msk.f32.mxu0 %vm5138_vm0, %v5139_v11  ;;  %v3952_v22 = vld [vmem:[%s6027_s9 + $0x18] sm:$0xff] }
 0x334   :  { %4834 = vmatprep.mubr.msk.f32.mxu1 %vm5138_vm0, %v5139_v11  ;;  %4828 = vmatpush3.msra.mxu0 %v3291_v23  ;;  %v5045_v23 = vpack.c.bf16 %v3952_v22, %v3951_v21 }
 0x335   :  { %4837 = vmatprep.subr.mxu0 %v5139_v11  ;;  %4833 = vmatpush3.msra.mxu1 %v3292_v24  ;;  %v4043_v24 = vld [vmem:[%s6029_s11] sm:$0xff] }
 0x336   :  { %4842 = vmatprep.subr.mxu1 %v5139_v11 }
 0x3ed   :  { %v2776_v26 = vpop.f32.mrb[34].mxu0 }
 0x3ee   :  { %v4791_v27 = vpop.f32.mrb[35].mxu0  ;;  %4830 = vmatmul.mubr.msk.f32.vlgmr.msra.gmra.mrb[42].mxu0 %vm2010_vm2, %v2776_v26  ;;  %v4045_v26 = vld [vmem:[%s6029_s11 + $0x10] sm:$0xff] }
 0x3ef   :  { %4838 = vmatpush3.msra.mxu0 %v3293_v25  ;;  %4839 = vmatprep.mubr.msk.f32.mxu0 %vm5138_vm0, %v5139_v11  ;;  %v4044_v25 = vld [vmem:[%s6029_s11 + $0x8] sm:$0xff] }
 0x3f0   :  { %4847 = vmatprep.subr.mxu0 %v5139_v11  ;;  %v5049_v27 = vpack.c.bf16 %v4044_v25, %v4043_v24 }
 0x3f1   :  { %v2849_v18 = vpop.f32.mrb[30].mxu1 }
 0x3f2   :  { %v4796_v28 = vpop.f32.mrb[31].mxu1  ;;  %4835 = vmatmul.mubr.msk.f32.vlgmr.msra.gmra.mrb[38].mxu1 %vm2010_vm2, %v2849_v18 }
 0x3f3   :  { %4843 = vmatpush3.msra.mxu1 %v3294_v3  ;;  %4844 = vmatprep.mubr.msk.f32.mxu1 %vm5138_vm0, %v5139_v11  ;;  %v4046_v3 = vld [vmem:[%s6029_s11 + $0x18] sm:$0xff]  ;;  %v4047_v28 = vld [vmem:[%s6029_s11 + $0x20] sm:$0xff] }
 0x3f4   :  { %4852 = vmatprep.subr.mxu1 %v5139_v11  ;;  %v5053_v18 = vpack.c.bf16 %v4046_v3, %v4045_v26 }
 0x3f5   :  { %v2922_v30 = vpop.f32.mrb[36].mxu0 }
 0x3f6   :  { %v4801_v31 = vpop.f32.mrb[37].mxu0  ;;  %4840 = vmatmul.mubr.msk.f32.vlgmr.msra.gmra.mrb[44].mxu0 %vm2010_vm2, %v2922_v30 }
 0x3f7   :  { %4848 = vmatpush3.msra.mxu0 %v3295_v29  ;;  %4849 = vmatprep.mubr.msk.f32.mxu0 %vm5138_vm0, %v5139_v11  ;;  %v4048_v29 = vld [vmem:[%s6029_s11 + $0x28] sm:$0xff] }
 0x3f8   :  { %4857 = vmatprep.subr.mxu0 %v5139_v11  ;;  %v5057_v30 = vpack.c.bf16 %v4048_v29, %v4047_v28 }
 0x3f9   :  { %v2995_v34 = vpop.f32.mrb[32].mxu1 }
 0x3fa   :  { %v4806_v35 = vpop.f32.mrb[33].mxu1  ;;  %4845 = vmatmul.mubr.msk.f32.vlgmr.msra.gmra.mrb[40].mxu1 %vm2010_vm2, %v2995_v34 }
 0x3fb   :  { %4853 = vmatpush3.msra.mxu1 %v3296_v32  ;;  %4854 = vmatprep.mubr.msk.f32.mxu1 %vm5138_vm0, %v5139_v11 }
 0x3fc   :  { %4862 = vmatprep.subr.mxu1 %v5139_v11 }
 0x3fd   :  { %v3068_v39 = vpop.f32.mrb[38].mxu0 }
 0x3fe   :  { %v3141_v42 = vpop.f32.mrb[34].mxu1  ;;  %v4811_v43 = vpop.f32.mrb[39].mxu0  ;;  %4850 = vmatmul.mubr.msk.f32.vlgmr.msra.gmra.mrb[46].mxu0 %vm2010_vm2, %v3068_v39 }
 0x3ff   :  { %v4816_v45 = vpop.f32.mrb[35].mxu1  ;;  %4855 = vmatmul.mubr.msk.f32.vlgmr.msra.gmra.mrb[42].mxu1 %vm2010_vm2, %v3141_v42  ;;  %4858 = vmatpush3.msra.mxu0 %v3297_v36 }
 0x400   :  { %4863 = vmatpush3.msra.mxu1 %v3298_v40  ;;  %4859 = vmatprep.mubr.msk.f32.mxu0 %vm5138_vm0, %v5139_v11 }
 0x401   :  { %4864 = vmatprep.mubr.msk.f32.mxu1 %vm5138_vm0, %v5139_v11  ;;  %5042 = vmatprep.subr.bf16.mxu0 %v5041_v44 }
 0x402   :  { %5050 = vmatprep.subr.bf16.mxu1 %v5049_v27 }
 0x405   :  { %v3214_v46 = vpop.f32.mrb[40].mxu0 }
 0x406   :  { %v3287_v47 = vpop.f32.mrb[36].mxu1  ;;  %v4821_v48 = vpop.f32.mrb[41].mxu0  ;;  %4860 = vmatmul.mubr.msk.f32.vlgmr.msra.gmra.mrb[48].mxu0 %vm2010_vm2, %v3214_v46 }
 0x407   :  { %v4826_v49 = vpop.f32.mrb[37].mxu1  ;;  %4865 = vmatmul.mubr.msk.f32.vlgmr.msra.gmra.mrb[44].mxu1 %vm2010_vm2, %v3287_v47  ;;  %5044 = vmatpush3.bf16.msra.mxu0 %v5041_v44 }
 0x408   :  { %5046 = vmatprep.subr.bf16.mxu0 %v5045_v23  ;;  %5052 = vmatpush3.bf16.msra.mxu1 %v5049_v27 }
 0x409   :  { %5054 = vmatprep.subr.bf16.mxu1 %v5053_v18 }
 0x40b   :  { %5048 = vmatpush3.bf16.msra.mxu0 %v5045_v23 }
 0x40c   :  { %5056 = vmatpush3.bf16.msra.mxu1 %v5053_v18 }
 0x40d   :  { %5058 = vmatprep.subr.bf16.mxu1 %v5057_v30 }
 0x410   :  { %5060 = vmatpush3.bf16.msra.mxu1 %v5057_v30 }
 0x4c1   :  { %v3368_v50 = vpop.f32.mrb[42].mxu0 }
 0x4c2   :  { %v4831_v51 = vpop.f32.mrb[43].mxu0 }
 0x4c5   :  { %v3441_v52 = vpop.f32.mrb[38].mxu1 }
 0x4c6   :  { %v4836_v53 = vpop.f32.mrb[39].mxu1 }
 0x4c7   :  { %v4289_v53 = vld [vmem:[%s6031_s13] ss:$0 sm:$0xff] }
 0x4c9   :  { %v3514_v54 = vpop.f32.mrb[44].mxu0 }
 0x4ca   :  { %v3883_v55 = vadd.f32 %v3514_v54, %v3368_v50  ;;  %v4841_v56 = vpop.f32.mrb[45].mxu0 }
 0x4cd   :  { %v3587_v57 = vpop.f32.mrb[40].mxu1 }
 0x4ce   :  { %v3884_v58 = vadd.f32 %v3587_v57, %v3441_v52  ;;  %v4846_v59 = vpop.f32.mrb[41].mxu1  ;;  %v4290_v57 = vld [vmem:[%s6032_s14] ss:$0 sm:$0xff] }
 0x4d1   :  { %v3660_v60 = vpop.f32.mrb[46].mxu0 }
 0x4d2   :  { %v3885_v11 = vadd.f32 %v3883_v55, %v3660_v60  ;;  %v3733_v61 = vpop.f32.mrb[42].mxu1  ;;  %v4851_v62 = vpop.f32.mrb[47].mxu0 }
 0x4d3   :  { %v3886_v63 = vadd.f32 %v3884_v58, %v3733_v61  ;;  %v4856_v0 = vpop.f32.mrb[43].mxu1  ;;  %v4049_v61 = vld [vmem:[%s6029_s11 + $0x30] sm:$0xff]  ;;  %v4050_v62 = vld [vmem:[%s6029_s11 + $0x38] sm:$0xff] }
 0x4d4   :  { %v4291_v0 = vld [vmem:[%s6028_s10] ss:$0 sm:$0xff] }
 0x4d9   :  { %v3806_v1 = vpop.f32.mrb[48].mxu0 }
 0x4da   :  { %v3887_v33 = vadd.f32 %v3885_v11, %v3806_v1  ;;  %v3879_v4 = vpop.f32.mrb[44].mxu1  ;;  %v4861_v5 = vpop.f32.mrb[49].mxu0 }
 0x4db   :  { %v3888_v6 = vadd.f32 %v3886_v63, %v3879_v4  ;;  %v4866_v37 = vpop.f32.mrb[45].mxu1  ;;  %v5061_v63 = vpack.c.bf16 %v4050_v62, %v4049_v61 }
 0x4dc   :  { %v3896_v7 = vadd.f32 %v4288_v2, %v3887_v33  ;;  %v4294_v37 = vld [vmem:[%s6030_s12] ss:$0 sm:$0xff] }
 0x4dd   :  { %v3897_v8 = vadd.f32 %v4288_v2, %v3888_v6  ;;  %5062 = vmatprep.subr.bf16.mxu1 %v5061_v63 }
 0x4de   :  { %v3898_v10 = vadd.f32 %v5111_v9, %v3896_v7  ;;  %5064 = vmatpush3.bf16.msra.mxu1 %v5061_v63 }
 0x4df   :  { %v3899_v38 = vadd.f32 %v5112_v12, %v3897_v8 }
 0x4e0   :  { %v3900_v13 = vsel %vm147_vm1, %v3898_v10, 0.0  ;;  %v3909_v14 = vmul.f32 %v3898_v10, %v3898_v10 }
 0x4e1   :  { %v3903_v15 = vsel %vm147_vm1, %v3899_v38, 0.0  ;;  %3901 = vadd.xlane.f32.xlu0 %v3900_v13  ;;  %v3910_v20 = vmul.f32 %v3899_v38, %v3899_v38 }
 0x4e2   :  { %3904 = vadd.xlane.f32.xlu1 %v3903_v15  ;;  %v3911_v16 = vsel %vm147_vm1, %v3909_v14, 0.0 }
 0x4e3   :  { %v3914_v17 = vsel %vm147_vm1, %v3910_v20, 0.0 }
 0x4e5   :  { %3912 = vadd.xlane.f32.xlu0 %v3911_v16 }
 0x4e6   :  { %3915 = vadd.xlane.f32.xlu1 %v3914_v17 }
 0x56e   :  { %v3902_v31 = vpop.xlane.xlu0 %3901 }
 0x56f   :  { %v3905_v32 = vpop.xlane.xlu1 %3904  ;;  %v3907_v34 = vmul.f32 0.03125, %v3902_v31 }
 0x570   :  { %v3908_v35 = vmul.f32 0.03125, %v3905_v32 }
 0x571   :  { %v3919_v39 = vmul.f32 %v3907_v34, %v3907_v34  ;;  %v3923_v50 = vsub.f32 %v3898_v10, %v3907_v34  ;;  %v4297_v34 = vld [vmem:[%s6033_s15] ss:$0 sm:$0xff] }
 0x572   :  { %v3913_v36 = vpop.xlane.xlu0 %3912  ;;  %v3920_v43 = vmul.f32 %v3908_v35, %v3908_v35  ;;  %v3924_v52 = vsub.f32 %v3899_v38, %v3908_v35 }
 0x573   :  { %v3916_v40 = vpop.xlane.xlu1 %3915  ;;  %v3917_v42 = vmul.f32 0.03125, %v3913_v36 }
 0x574   :  { %v3918_v45 = vmul.f32 0.03125, %v3916_v40  ;;  %v4298_v40 = vld [vmem:[%s6034_s16] ss:$0 sm:$0xff] }
 0x575   :  { %v3921_v46 = vsub.f32 %v3917_v42, %v3919_v39 }
 0x576   :  { %v3922_v47 = vsub.f32 %v3918_v45, %v3920_v43 }
 0x577   :  { %v3925_v48 = vadd.f32 1e-05, %v3921_v46 }
 0x578   :  { %v3926_v49 = vadd.f32 1e-05, %v3922_v47 }
 0x579   :  { %5103 = vrsqrt.f32 %v3925_v48 }
 0x57a   :  { %5105 = vrsqrt.f32 %v3926_v49 }
 0x583   :  { %v5104_v51 = vpop.eup %5103 }
 0x584   :  { %v5106_v54 = vpop.eup %5105  ;;  %v3929_v55 = vmul.f32 %v5104_v51, %v3923_v50 }
 0x585   :  { %v3930_v56 = vmul.f32 %v5106_v54, %v3924_v52 }
 0x586   :  { %v3938_v58 = vmul.f32 %v4289_v53, %v3929_v55 }
 0x587   :  { %v3939_v59 = vmul.f32 %v4289_v53, %v3930_v56 }
 0x588   :  { %v3947_v60 = vadd.f32 %v4290_v57, %v3938_v58 }
 0x589   :  { %v3948_v11 = vadd.f32 %v4290_v57, %v3939_v59 }
 0x58a   :  { %4875 = vmatprep.mubr.msk.f32.mxu0 %vm147_vm1, %v3947_v60 }
 0x58b   :  { %4876 = vmatmul.mubr.msk.f32.vlgmr.msra.gmra.mrb[50].mxu0 %vm147_vm1, %v3948_v11 }
 0x65e   :  { %v4877_v1 = vpop.f32.mrb[50].mxu0 }
 0x65f   :  { %v4038_v2 = vadd.f32 %v4877_v1, %v4291_v0  ;;  %v4032_v33 = vpop.f32.mrb[51].mxu0 }
 0x660   :  { %v4033_v4 = vadd.f32 %v4291_v0, %v4032_v33 }
 0x661   :  { %v4042_v6 = vmax.f32 %v4038_v2, 0.0 }
 0x662   :  { %v4041_v5 = vmax.f32 %v4033_v4, 0.0 }
 0x664   :  { %4894 = vmatprep.mubr.msk.f32.mxu1 %vm4058_vm3, %v4041_v5 }
 0x665   :  { %4895 = vmatmul.mubr.msk.f32.vlgmr.msra.gmra.mrb[46].mxu1 %vm4058_vm3, %v4042_v6 }
 0x738   :  { %v4896_v7 = vpop.f32.mrb[46].mxu1 }
 0x739   :  { %v4137_v8 = vadd.f32 %v4896_v7, %v4294_v37  ;;  %v4131_v9 = vpop.f32.mrb[47].mxu1 }
 0x73a   :  { %v4132_v10 = vadd.f32 %v4294_v37, %v4131_v9 }
 0x73b   :  { %v4141_v12 = vadd.f32 %v4137_v8, %v3948_v11 }
 0x73c   :  { %v4140_v38 = vadd.f32 %v4132_v10, %v3947_v60 }
 0x73d   :  { %v4145_v13 = vsel %vm147_vm1, %v4141_v12, 0.0  ;;  %v4151_v14 = vmul.f32 %v4141_v12, %v4141_v12 }
 0x73e   :  { %4146 = vadd.xlane.f32.xlu1 %v4145_v13  ;;  %v4142_v15 = vsel %vm147_vm1, %v4140_v38, 0.0  ;;  %v4150_v20 = vmul.f32 %v4140_v38, %v4140_v38 }
 0x73f   :  { %4143 = vadd.xlane.f32.xlu0 %v4142_v15  ;;  %v4155_v16 = vsel %vm147_vm1, %v4151_v14, 0.0 }
 0x740   :  { %v4152_v17 = vsel %vm147_vm1, %v4150_v20, 0.0 }
 0x742   :  { %4156 = vadd.xlane.f32.xlu1 %v4155_v16 }
 0x743   :  { %4153 = vadd.xlane.f32.xlu0 %v4152_v17 }
 0x7cb   :  { %v4147_v19 = vpop.xlane.xlu1 %4146 }
 0x7cc   :  { %v4149_v41 = vmul.f32 0.03125, %v4147_v19  ;;  %v4144_v21 = vpop.xlane.xlu0 %4143 }
 0x7cd   :  { %v4148_v44 = vmul.f32 0.03125, %v4144_v21 }
 0x7ce   :  { %v4161_v23 = vmul.f32 %v4149_v41, %v4149_v41  ;;  %v4165_v30 = vsub.f32 %v4141_v12, %v4149_v41 }
 0x7cf   :  { %v4157_v22 = vpop.xlane.xlu1 %4156  ;;  %v4160_v26 = vmul.f32 %v4148_v44, %v4148_v44  ;;  %v4164_v32 = vsub.f32 %v4140_v38, %v4148_v44 }
 0x7d0   :  { %v4159_v24 = vmul.f32 0.03125, %v4157_v22  ;;  %v4154_v25 = vpop.xlane.xlu0 %4153 }
 0x7d1   :  { %v4158_v27 = vmul.f32 0.03125, %v4154_v25 }
 0x7d2   :  { %v4163_v3 = vsub.f32 %v4159_v24, %v4161_v23 }
 0x7d3   :  { %v4162_v18 = vsub.f32 %v4158_v27, %v4160_v26 }
 0x7d4   :  { %v4167_v28 = vadd.f32 1e-05, %v4163_v3 }
 0x7d5   :  { %v4166_v29 = vadd.f32 1e-05, %v4162_v18 }
 0x7d6   :  { %5107 = vrsqrt.f32 %v4167_v28 }
 0x7d7   :  { %5109 = vrsqrt.f32 %v4166_v29 }
 0x7e0   :  { %v5108_v31 = vpop.eup %5107 }
 0x7e1   :  { %v5110_v35 = vpop.eup %5109  ;;  %v4171_v36 = vmul.f32 %v5108_v31, %v4165_v30 }
 0x7e2   :  { %v4170_v39 = vmul.f32 %v5110_v35, %v4164_v32 }
 0x7e3   :  { %v4180_v42 = vmul.f32 %v4297_v34, %v4171_v36 }
 0x7e4   :  { %v4179_v43 = vmul.f32 %v4297_v34, %v4170_v39 }
 0x7e5   :  { %v4189_v45 = vadd.f32 %v4298_v40, %v4180_v42 }
 0x7e6   :  { %v4188_v46 = vadd.f32 %v4298_v40, %v4179_v43 }
 0x7e7   :  { %4191 = vst.msk [vmem:[#allocation2 + $0x8] sm:$0xff] %vm147_vm1, %v4189_v45 }
 0x7e8   :  { %4190 = vst.msk [vmem:[#allocation2] sm:$0xff] %vm147_vm1, %v4188_v46 }
 0x7e9   :  { %5124 = shalt.err (!%p5121_p4)
}
 0x7ea   :  { %s5125_s29 = scalar_lea.hbm %s6035_s17, 256 }
 0x7eb   :  { %p5126_p5 = scmp.ne.s32.totalorder %s6035_s17, %s5125_s29  ;;  %p5129_p6 = scmp.lt.u32.totalorder %s5125_s29, %s6035_s17 }
 0x7ed   :  { %p5131_p7 = pnand %p5129_p6, %p5126_p5 }
 0x7ef   :  { %5134 = shalt.err (!%p5131_p7)
}
 0x7f0   :  { %s5141_s18 = smov 128   ;;  %s5142_s7 = smov 8  }
 0x7f1   :  { %4203 = dma.vmem_to_hbm [thread:$0]  %s4198_s27, 256, %s6035_s17, [#allocation3], %s5141_s18, %s5141_s18, %s5142_s7  }
 0x7f2   :  { %5135 = dma.done.wait [#allocation3], 256  }
 0x7f3   :  { %5136 = vsyncadd [#allocation3], 4294967040 }
 0x7f4   :  { %4207 = vsyncpa [#allocation3], 1 }

</bundles_post_ra>
